<compile_context>
chip_gen: v7x
topology: tpu7x:2x2x1
jax: 0.10.0
libtpu: 0.0.40
codegen_flags: <defaults>
</compile_context>

<pallas_src>
import jax
import jax.numpy as jnp
from jax import lax
from jax.experimental import pallas as pl
from jax.experimental.pallas import tpu as pltpu


def _round_up(n, m):
    return ((n + m - 1) // m) * m


def _interact_attention_kernel(x_ref, yw12_ref, yw3_ref, a2c_ref, out_ref, w_sc):
    """One grid step processes a chunk of Bt batch elements.

    x_ref   : (Bt, F, R)   region features for this chunk
    yw12_ref: (2I, F)      rows [0:I] = y@W_1, rows [I:2I] = y@W_2 (precomputed)
    yw3_ref : (I, F)       y@W_3 (precomputed)
    a2c_ref : (I, Kp)      att2cls zero-padded to lane-dense Kp (multiple of 128)
    out_ref : (Bt, Kp)     chunk logits, single lane-dense store per step
    w_sc    : (I, Bt)      VMEM scratch: per-batch attribute weights A_p * S_p
    """
    Bt = x_ref.shape[0]
    I = yw12_ref.shape[0] // 2

    # Batch-invariant operands: load once per grid step, reuse for all Bt batches.
    yw12 = yw12_ref[...]                       # (2I, F)
    yw3 = yw3_ref[...]                         # (I, F)

    # Statically unrolled loop over the chunk (Bt is a small compile-time
    # constant) -> all ref slices below are static; no dynamic minor-dim stores.
    for bi in range(Bt):
        xb = x_ref[bi]                                             # (F, R)

        # L2 normalize along features: rsqrt-multiply (EUP) instead of
        # sqrt + divide.  Clamping sum(x*x) at 1e-24 == clamping the norm at
        # 1e-12, matching F.normalize.
        ss = jnp.sum(xb * xb, axis=0, keepdims=True)               # (1, R)
        xn = xb * lax.rsqrt(jnp.maximum(ss, 1e-24))                # (F, R)

        # Fused S/A projection: one (2I,F)x(F,R) MXU push instead of two.
        sa = jnp.dot(yw12, xn, preferred_element_type=jnp.float32)  # (2I, R)
        s = sa[:I]                                                 # (I, R)
        a_logit = sa[I:]                                           # (I, R)

        # Softmax over regions; divide replaced by EUP reciprocal + one Newton
        # refinement step (keeps full f32 accuracy, frees VALU slots).
        m = jnp.max(a_logit, axis=-1, keepdims=True)               # (I, 1)
        e = jnp.exp(a_logit - m)                                   # (I, R)
        denom = jnp.sum(e, axis=-1, keepdims=True)                 # (I, 1)
        inv = pl.reciprocal(denom, approx=True)
        inv = inv * (2.0 - denom * inv)                            # Newton step
        a = e * inv                                                # (I, R)

        # F_p[i, f] = sum_r a[i, r] * xn[f, r]
        f_p = lax.dot_general(a, xn, (((1,), (1,)), ((), ())),
                              preferred_element_type=jnp.float32)  # (I, F)

        s_p = jnp.sum(a * s, axis=-1, keepdims=True)               # (I, 1)
        a_p = jax.nn.sigmoid(
            jnp.sum(yw3 * f_p, axis=-1, keepdims=True))            # (I, 1)

        w_sc[:, bi:bi + 1] = a_p * s_p                             # column bi

    # Single class projection + single unmasked lane-dense store for the chunk:
    # out[b, k] = sum_i w_sc[i, b] * att2cls[i, k]
    out_ref[...] = lax.dot_general(
        w_sc[...], a2c_ref[...], (((0,), (0,)), ((), ())),
        preferred_element_type=jnp.float32)                        # (Bt, Kp)


def interact_attention(x, y, w1, w2, w3, att2cls, vec_bias=None, *, batch_tile=8):
    B, F_, R = x.shape
    I, V = y.shape
    K = att2cls.shape[1]

    # --- Hoist batch-invariant projections out of the kernel ------------------
    # One fused (I,V)x(V,3F) matmul in the wrapper instead of three matmuls
    # re-done on every grid step inside the kernel.
    w_cat = jnp.concatenate([w1, w2, w3], axis=1).astype(jnp.float32)   # (V, 3F)
    yw = jnp.dot(y.astype(jnp.float32), w_cat,
                 preferred_element_type=jnp.float32)                    # (I, 3F)
    yw12 = jnp.concatenate([yw[:, :F_], yw[:, F_:2 * F_]], axis=0)      # (2I, F)
    yw3 = yw[:, 2 * F_:]                                                # (I, F)

    # --- Lane-dense output layout ---------------------------------------------
    # Pad the class dim to a multiple of 128 so each chunk's output store is a
    # full-lane (unmasked) store; sliced back to K in the wrapper.
    Kp = _round_up(K, 128)
    a2c_pad = jnp.zeros((I, Kp), jnp.float32).at[:, :K].set(
        att2cls.astype(jnp.float32))

    # --- Batch chunking ---------------------------------------------------------
    # Amortize per-grid-step overhead over Bt batches.  Bt is a multiple of 8 so
    # the (Bt, Kp) output block is tile-aligned; B is zero-padded to a multiple
    # of Bt (padded rows produce zero logits and are sliced off).
    Bt = max(8, _round_up(min(batch_tile, B), 8))
    B_pad = _round_up(B, Bt)
    if B_pad != B:
        x = jnp.pad(x, ((0, B_pad - B), (0, 0), (0, 0)))
    num_chunks = B_pad // Bt
    # NOTE (v7x): at production batch sizes pick Bt so num_chunks >= 2 (and even)
    # to feed both TensorCores; at CLIP-scale dims also set
    # pltpu.CompilerParams(vmem_limit_bytes=...) and cast the dot operands to
    # bf16 on v6e/v7x.  VMEM use at these shapes is tiny, so defaults suffice.

    out_pad = pl.pallas_call(
        _interact_attention_kernel,
        out_shape=jax.ShapeDtypeStruct((B_pad, Kp), jnp.float32),
        grid_spec=pltpu.PrefetchScalarGridSpec(
            num_scalar_prefetch=0,
            grid=(num_chunks,),
            in_specs=[
                pl.BlockSpec((Bt, F_, R), lambda c: (c, 0, 0)),    # x chunk
                pl.BlockSpec((2 * I, F_), lambda c: (0, 0)),       # [y@W1; y@W2]
                pl.BlockSpec((I, F_), lambda c: (0, 0)),           # y@W3
                pl.BlockSpec((I, Kp), lambda c: (0, 0)),           # att2cls (padded)
            ],
            out_specs=pl.BlockSpec((Bt, Kp), lambda c: (c, 0)),
            scratch_shapes=[pltpu.VMEM((I, Bt), jnp.float32)],
        ),
        compiler_params=pltpu.CompilerParams(
            dimension_semantics=("parallel",)),
    )(x.astype(jnp.float32), yw12, yw3, a2c_pad)

    out = out_pad[:B, :K]
    if vec_bias is not None:
        out = out + vec_bias
    return out


def _reference(x, y, w1, w2, w3, att2cls, vec_bias=None):
    # Pure-JAX mirror of the PyTorch forward for verification.
    norm = jnp.sqrt(jnp.sum(x * x, axis=1, keepdims=True))
    xn = x / jnp.maximum(norm, 1e-12)
    S = jnp.einsum('iv,vf,bfr->bir', y, w1, xn)
    A = jnp.einsum('iv,vf,bfr->bir', y, w2, xn)
    A = jax.nn.softmax(A, axis=-1)
    F_p = jnp.einsum('bir,bfr->bif', A, xn)
    S_p = jnp.einsum('bir,bir->bi', A, S)
    A_p = jax.nn.sigmoid(jnp.einsum('iv,vf,bif->bi', y, w3, F_p))
    S_pp = jnp.einsum('ki,bi,bi->bik', att2cls.T, A_p, S_p)
    S_pp = jnp.sum(S_pp, axis=1)
    if vec_bias is not None:
        S_pp = S_pp + vec_bias
    return S_pp


if __name__ == "__main__":
    # Small deterministic shapes implied by the forward:
    B, F_, R = 2, 32, 16          # x: (batch, x_dim, regions)
    I, V = 8, 16                  # y: (num_attributes, y_dim)
    K = 8                         # att2cls: (num_attributes, num_classes)

    key = jax.random.PRNGKey(0)
    kx, ky, kw1, kw2, kw3, ka2c, kbias, kx2 = jax.random.split(key, 8)

    x = jax.random.normal(kx, (B, F_, R), dtype=jnp.float32)
    y = jax.random.normal(ky, (I, V), dtype=jnp.float32)
    att2cls = jax.random.normal(ka2c, (I, K), dtype=jnp.float32)
    vec_bias = 0.1 * jax.random.normal(kbias, (K,), dtype=jnp.float32)
    w1 = jax.random.normal(kw1, (V, F_), dtype=jnp.float32)

    # Case 1: parameters per __init__ (W_2 = W_3 = 0).
    w2 = jnp.zeros((V, F_), dtype=jnp.float32)
    w3 = jnp.zeros((V, F_), dtype=jnp.float32)
    out = jax.block_until_ready(interact_attention(x, y, w1, w2, w3, att2cls, vec_bias))
    ref = _reference(x, y, w1, w2, w3, att2cls, vec_bias)
    assert out.shape == (B, K)
    assert jnp.allclose(out, ref, atol=1e-4, rtol=1e-4)

    # Case 2: non-zero W_2 / W_3 to exercise the softmax / sigmoid paths.
    w2r = 0.5 * jax.random.normal(kw2, (V, F_), dtype=jnp.float32)
    w3r = 0.5 * jax.random.normal(kw3, (V, F_), dtype=jnp.float32)
    out2 = jax.block_until_ready(interact_attention(x, y, w1, w2r, w3r, att2cls, vec_bias))
    ref2 = _reference(x, y, w1, w2r, w3r, att2cls, vec_bias)
    assert jnp.allclose(out2, ref2, atol=1e-4, rtol=1e-4)

    # Case 3: larger batch spanning multiple grid chunks (exercises chunking/padding).
    B3 = 12
    x3 = jax.random.normal(kx2, (B3, F_, R), dtype=jnp.float32)
    out3 = jax.block_until_ready(
        interact_attention(x3, y, w1, w2r, w3r, att2cls, vec_bias, batch_tile=8))
    ref3 = _reference(x3, y, w1, w2r, w3r, att2cls, vec_bias)
    assert out3.shape == (B3, K)
    assert jnp.allclose(out3, ref3, atol=1e-4, rtol=1e-4)

    print("KERNEL_OK")
</pallas_src>

<mosaic_0001>
module attributes {stable_mosaic.version = 11 : i64} {
  func.func @_interact_attention_kernel(%arg0: i32, %arg1: memref<8x32x16xf32, #tpu.memory_space<vmem>>, %arg2: memref<16x32xf32, #tpu.memory_space<vmem>>, %arg3: memref<8x32xf32, #tpu.memory_space<vmem>>, %arg4: memref<8x128xf32, #tpu.memory_space<vmem>>, %arg5: memref<8x128xf32, #tpu.memory_space<vmem>>, %arg6: memref<8x8xf32, #tpu.memory_space<vmem>>) attributes {dimension_semantics = [#tpu.dimension_semantics<parallel>], iteration_bounds = array<i64: 1>, scalar_prefetch = 0 : i64, scratch_operands = 1 : i64, tpu.core_type = #tpu.core_type<tc>, window_params = [{transform_indices = @transform_0, window_bounds = array<i64: 8, 32, 16>}, {pipeline_mode = #tpu.pipeline_mode<synchronous>, transform_indices = @transform_1, window_bounds = array<i64: 16, 32>}, {pipeline_mode = #tpu.pipeline_mode<synchronous>, transform_indices = @transform_2, window_bounds = array<i64: 8, 32>}, {pipeline_mode = #tpu.pipeline_mode<synchronous>, transform_indices = @transform_3, window_bounds = array<i64: 8, 128>}, {transform_indices = @transform_4, window_bounds = array<i64: 8, 128>}]} {
    %c0 = arith.constant 0 : index
    %c0_0 = arith.constant 0 : index
    %0 = vector.load %arg2[%c0, %c0_0] : memref<16x32xf32, #tpu.memory_space<vmem>>, vector<16x32xf32>
    %c0_1 = arith.constant 0 : index
    %c0_2 = arith.constant 0 : index
    %1 = vector.load %arg3[%c0_1, %c0_2] : memref<8x32xf32, #tpu.memory_space<vmem>>, vector<8x32xf32>
    %c0_3 = arith.constant 0 : index
    %c0_4 = arith.constant 0 : index
    %c0_5 = arith.constant 0 : index
    %2 = vector.load %arg1[%c0_3, %c0_4, %c0_5] : memref<8x32x16xf32, #tpu.memory_space<vmem>>, vector<1x32x16xf32>
    %3 = vector.shape_cast %2 : vector<1x32x16xf32> to vector<32x16xf32>
    %4 = arith.mulf %3, %3 : vector<32x16xf32>
    %cst = arith.constant dense<0.000000e+00> : vector<16xf32>
    %5 = vector.multi_reduction <add>, %4, %cst [0] : vector<32x16xf32> to vector<16xf32>
    %6 = vector.shape_cast %5 : vector<16xf32> to vector<1x16xf32>
    %cst_6 = arith.constant 1.000000e-24 : f32
    %7 = vector.broadcast %cst_6 : f32 to vector<1x16xf32>
    %8 = arith.maximumf %6, %7 : vector<1x16xf32>
    %9 = math.rsqrt %8 : vector<1x16xf32>
    %10 = vector.broadcast %9 : vector<1x16xf32> to vector<32x16xf32>
    %11 = arith.mulf %3, %10 : vector<32x16xf32>
    %cst_7 = arith.constant dense<0.000000e+00> : vector<16x16xf32>
    %12 = tpu.matmul %0, %11, %cst_7 {dimension_numbers = #tpu.dot_dimension_numbers<[1], [0], [0], [1], [0, 0, 1, 1], [], []>} : vector<16x32xf32>, vector<32x16xf32>, vector<16x16xf32> -> vector<16x16xf32>
    %13 = vector.extract_strided_slice %12 {offsets = [0, 0], sizes = [8, 16], strides = [1, 1]} : vector<16x16xf32> to vector<8x16xf32>
    %14 = vector.extract_strided_slice %12 {offsets = [8, 0], sizes = [8, 16], strides = [1, 1]} : vector<16x16xf32> to vector<8x16xf32>
    %cst_8 = arith.constant dense<0xFF800000> : vector<8xf32>
    %15 = vector.multi_reduction <maximumf>, %14, %cst_8 [1] : vector<8x16xf32> to vector<8xf32>
    %16 = vector.shape_cast %15 : vector<8xf32> to vector<8x1xf32>
    %17 = vector.broadcast %16 : vector<8x1xf32> to vector<8x16xf32>
    %18 = arith.subf %14, %17 : vector<8x16xf32>
    %19 = math.exp %18 : vector<8x16xf32>
    %cst_9 = arith.constant dense<0.000000e+00> : vector<8xf32>
    %20 = vector.multi_reduction <add>, %19, %cst_9 [1] : vector<8x16xf32> to vector<8xf32>
    %21 = vector.shape_cast %20 : vector<8xf32> to vector<8x1xf32>
    %22 = tpu.reciprocal %21 {approx = true} : vector<8x1xf32> -> vector<8x1xf32>
    %23 = arith.mulf %21, %22 : vector<8x1xf32>
    %cst_10 = arith.constant 2.000000e+00 : f32
    %24 = vector.broadcast %cst_10 : f32 to vector<8x1xf32>
    %25 = arith.subf %24, %23 : vector<8x1xf32>
    %26 = arith.mulf %22, %25 : vector<8x1xf32>
    %27 = vector.broadcast %26 : vector<8x1xf32> to vector<8x16xf32>
    %28 = arith.mulf %19, %27 : vector<8x16xf32>
    %cst_11 = arith.constant dense<0.000000e+00> : vector<8x32xf32>
    %29 = tpu.matmul %28, %11, %cst_11 {dimension_numbers = #tpu.dot_dimension_numbers<[1], [1], [0], [0], [0, 0, 1, 0], [], []>} : vector<8x16xf32>, vector<32x16xf32>, vector<8x32xf32> -> vector<8x32xf32>
    %30 = arith.mulf %28, %13 : vector<8x16xf32>
    %cst_12 = arith.constant dense<0.000000e+00> : vector<8xf32>
    %31 = vector.multi_reduction <add>, %30, %cst_12 [1] : vector<8x16xf32> to vector<8xf32>
    %32 = vector.shape_cast %31 : vector<8xf32> to vector<8x1xf32>
    %33 = arith.mulf %1, %29 : vector<8x32xf32>
    %cst_13 = arith.constant dense<0.000000e+00> : vector<8xf32>
    %34 = vector.multi_reduction <add>, %33, %cst_13 [1] : vector<8x32xf32> to vector<8xf32>
    %35 = vector.shape_cast %34 : vector<8xf32> to vector<8x1xf32>
    %36 = arith.negf %35 : vector<8x1xf32>
    %37 = math.exp %36 : vector<8x1xf32>
    %cst_14 = arith.constant 1.000000e+00 : f32
    %38 = vector.broadcast %cst_14 : f32 to vector<8x1xf32>
    %39 = arith.addf %38, %37 : vector<8x1xf32>
    %40 = arith.divf %38, %39 : vector<8x1xf32>
    %41 = arith.mulf %40, %32 : vector<8x1xf32>
    %c0_15 = arith.constant 0 : index
    %c0_16 = arith.constant 0 : index
    %42 = vector.load %arg6[%c0_15, %c0_16] : memref<8x8xf32, #tpu.memory_space<vmem>>, vector<8x1xf32>
    tpu.vector_store %arg6[%c0_15, %c0_16], %41 {strides = array<i32>} : memref<8x8xf32, #tpu.memory_space<vmem>>, vector<8x1xf32>,
    %c1 = arith.constant 1 : index
    %c0_17 = arith.constant 0 : index
    %c0_18 = arith.constant 0 : index
    %43 = vector.load %arg1[%c1, %c0_17, %c0_18] : memref<8x32x16xf32, #tpu.memory_space<vmem>>, vector<1x32x16xf32>
    %44 = vector.shape_cast %43 : vector<1x32x16xf32> to vector<32x16xf32>
    %45 = arith.mulf %44, %44 : vector<32x16xf32>
    %cst_19 = arith.constant dense<0.000000e+00> : vector<16xf32>
    %46 = vector.multi_reduction <add>, %45, %cst_19 [0] : vector<32x16xf32> to vector<16xf32>
    %47 = vector.shape_cast %46 : vector<16xf32> to vector<1x16xf32>
    %cst_20 = arith.constant 1.000000e-24 : f32
    %48 = vector.broadcast %cst_20 : f32 to vector<1x16xf32>
    %49 = arith.maximumf %47, %48 : vector<1x16xf32>
    %50 = math.rsqrt %49 : vector<1x16xf32>
    %51 = vector.broadcast %50 : vector<1x16xf32> to vector<32x16xf32>
    %52 = arith.mulf %44, %51 : vector<32x16xf32>
    %cst_21 = arith.constant dense<0.000000e+00> : vector<16x16xf32>
    %53 = tpu.matmul %0, %52, %cst_21 {dimension_numbers = #tpu.dot_dimension_numbers<[1], [0], [0], [1], [0, 0, 1, 1], [], []>} : vector<16x32xf32>, vector<32x16xf32>, vector<16x16xf32> -> vector<16x16xf32>
    %54 = vector.extract_strided_slice %53 {offsets = [0, 0], sizes = [8, 16], strides = [1, 1]} : vector<16x16xf32> to vector<8x16xf32>
    %55 = vector.extract_strided_slice %53 {offsets = [8, 0], sizes = [8, 16], strides = [1, 1]} : vector<16x16xf32> to vector<8x16xf32>
    %cst_22 = arith.constant dense<0xFF800000> : vector<8xf32>
    %56 = vector.multi_reduction <maximumf>, %55, %cst_22 [1] : vector<8x16xf32> to vector<8xf32>
    %57 = vector.shape_cast %56 : vector<8xf32> to vector<8x1xf32>
    %58 = vector.broadcast %57 : vector<8x1xf32> to vector<8x16xf32>
    %59 = arith.subf %55, %58 : vector<8x16xf32>
    %60 = math.exp %59 : vector<8x16xf32>
    %cst_23 = arith.constant dense<0.000000e+00> : vector<8xf32>
    %61 = vector.multi_reduction <add>, %60, %cst_23 [1] : vector<8x16xf32> to vector<8xf32>
    %62 = vector.shape_cast %61 : vector<8xf32> to vector<8x1xf32>
    %63 = tpu.reciprocal %62 {approx = true} : vector<8x1xf32> -> vector<8x1xf32>
    %64 = arith.mulf %62, %63 : vector<8x1xf32>
    %cst_24 = arith.constant 2.000000e+00 : f32
    %65 = vector.broadcast %cst_24 : f32 to vector<8x1xf32>
    %66 = arith.subf %65, %64 : vector<8x1xf32>
    %67 = arith.mulf %63, %66 : vector<8x1xf32>
    %68 = vector.broadcast %67 : vector<8x1xf32> to vector<8x16xf32>
    %69 = arith.mulf %60, %68 : vector<8x16xf32>
    %cst_25 = arith.constant dense<0.000000e+00> : vector<8x32xf32>
    %70 = tpu.matmul %69, %52, %cst_25 {dimension_numbers = #tpu.dot_dimension_numbers<[1], [1], [0], [0], [0, 0, 1, 0], [], []>} : vector<8x16xf32>, vector<32x16xf32>, vector<8x32xf32> -> vector<8x32xf32>
    %71 = arith.mulf %69, %54 : vector<8x16xf32>
    %cst_26 = arith.constant dense<0.000000e+00> : vector<8xf32>
    %72 = vector.multi_reduction <add>, %71, %cst_26 [1] : vector<8x16xf32> to vector<8xf32>
    %73 = vector.shape_cast %72 : vector<8xf32> to vector<8x1xf32>
    %74 = arith.mulf %1, %70 : vector<8x32xf32>
    %cst_27 = arith.constant dense<0.000000e+00> : vector<8xf32>
    %75 = vector.multi_reduction <add>, %74, %cst_27 [1] : vector<8x32xf32> to vector<8xf32>
    %76 = vector.shape_cast %75 : vector<8xf32> to vector<8x1xf32>
    %77 = arith.negf %76 : vector<8x1xf32>
    %78 = math.exp %77 : vector<8x1xf32>
    %cst_28 = arith.constant 1.000000e+00 : f32
    %79 = vector.broadcast %cst_28 : f32 to vector<8x1xf32>
    %80 = arith.addf %79, %78 : vector<8x1xf32>
    %81 = arith.divf %79, %80 : vector<8x1xf32>
    %82 = arith.mulf %81, %73 : vector<8x1xf32>
    %c0_29 = arith.constant 0 : index
    %c1_30 = arith.constant 1 : index
    %83 = vector.load %arg6[%c0_29, %c1_30] : memref<8x8xf32, #tpu.memory_space<vmem>>, vector<8x1xf32>
    tpu.vector_store %arg6[%c0_29, %c1_30], %82 {strides = array<i32>} : memref<8x8xf32, #tpu.memory_space<vmem>>, vector<8x1xf32>,
    %c2 = arith.constant 2 : index
    %c0_31 = arith.constant 0 : index
    %c0_32 = arith.constant 0 : index
    %84 = vector.load %arg1[%c2, %c0_31, %c0_32] : memref<8x32x16xf32, #tpu.memory_space<vmem>>, vector<1x32x16xf32>
    %85 = vector.shape_cast %84 : vector<1x32x16xf32> to vector<32x16xf32>
    %86 = arith.mulf %85, %85 : vector<32x16xf32>
    %cst_33 = arith.constant dense<0.000000e+00> : vector<16xf32>
    %87 = vector.multi_reduction <add>, %86, %cst_33 [0] : vector<32x16xf32> to vector<16xf32>
    %88 = vector.shape_cast %87 : vector<16xf32> to vector<1x16xf32>
    %cst_34 = arith.constant 1.000000e-24 : f32
    %89 = vector.broadcast %cst_34 : f32 to vector<1x16xf32>
    %90 = arith.maximumf %88, %89 : vector<1x16xf32>
    %91 = math.rsqrt %90 : vector<1x16xf32>
    %92 = vector.broadcast %91 : vector<1x16xf32> to vector<32x16xf32>
    %93 = arith.mulf %85, %92 : vector<32x16xf32>
    %cst_35 = arith.constant dense<0.000000e+00> : vector<16x16xf32>
    %94 = tpu.matmul %0, %93, %cst_35 {dimension_numbers = #tpu.dot_dimension_numbers<[1], [0], [0], [1], [0, 0, 1, 1], [], []>} : vector<16x32xf32>, vector<32x16xf32>, vector<16x16xf32> -> vector<16x16xf32>
    %95 = vector.extract_strided_slice %94 {offsets = [0, 0], sizes = [8, 16], strides = [1, 1]} : vector<16x16xf32> to vector<8x16xf32>
    %96 = vector.extract_strided_slice %94 {offsets = [8, 0], sizes = [8, 16], strides = [1, 1]} : vector<16x16xf32> to vector<8x16xf32>
    %cst_36 = arith.constant dense<0xFF800000> : vector<8xf32>
    %97 = vector.multi_reduction <maximumf>, %96, %cst_36 [1] : vector<8x16xf32> to vector<8xf32>
    %98 = vector.shape_cast %97 : vector<8xf32> to vector<8x1xf32>
    %99 = vector.broadcast %98 : vector<8x1xf32> to vector<8x16xf32>
    %100 = arith.subf %96, %99 : vector<8x16xf32>
    %101 = math.exp %100 : vector<8x16xf32>
    %cst_37 = arith.constant dense<0.000000e+00> : vector<8xf32>
    %102 = vector.multi_reduction <add>, %101, %cst_37 [1] : vector<8x16xf32> to vector<8xf32>
    %103 = vector.shape_cast %102 : vector<8xf32> to vector<8x1xf32>
    %104 = tpu.reciprocal %103 {approx = true} : vector<8x1xf32> -> vector<8x1xf32>
    %105 = arith.mulf %103, %104 : vector<8x1xf32>
    %cst_38 = arith.constant 2.000000e+00 : f32
    %106 = vector.broadcast %cst_38 : f32 to vector<8x1xf32>
    %107 = arith.subf %106, %105 : vector<8x1xf32>
    %108 = arith.mulf %104, %107 : vector<8x1xf32>
    %109 = vector.broadcast %108 : vector<8x1xf32> to vector<8x16xf32>
    %110 = arith.mulf %101, %109 : vector<8x16xf32>
    %cst_39 = arith.constant dense<0.000000e+00> : vector<8x32xf32>
    %111 = tpu.matmul %110, %93, %cst_39 {dimension_numbers = #tpu.dot_dimension_numbers<[1], [1], [0], [0], [0, 0, 1, 0], [], []>} : vector<8x16xf32>, vector<32x16xf32>, vector<8x32xf32> -> vector<8x32xf32>
    %112 = arith.mulf %110, %95 : vector<8x16xf32>
    %cst_40 = arith.constant dense<0.000000e+00> : vector<8xf32>
    %113 = vector.multi_reduction <add>, %112, %cst_40 [1] : vector<8x16xf32> to vector<8xf32>
    %114 = vector.shape_cast %113 : vector<8xf32> to vector<8x1xf32>
    %115 = arith.mulf %1, %111 : vector<8x32xf32>
    %cst_41 = arith.constant dense<0.000000e+00> : vector<8xf32>
    %116 = vector.multi_reduction <add>, %115, %cst_41 [1] : vector<8x32xf32> to vector<8xf32>
    %117 = vector.shape_cast %116 : vector<8xf32> to vector<8x1xf32>
    %118 = arith.negf %117 : vector<8x1xf32>
    %119 = math.exp %118 : vector<8x1xf32>
    %cst_42 = arith.constant 1.000000e+00 : f32
    %120 = vector.broadcast %cst_42 : f32 to vector<8x1xf32>
    %121 = arith.addf %120, %119 : vector<8x1xf32>
    %122 = arith.divf %120, %121 : vector<8x1xf32>
    %123 = arith.mulf %122, %114 : vector<8x1xf32>
    %c0_43 = arith.constant 0 : index
    %c2_44 = arith.constant 2 : index
    %124 = vector.load %arg6[%c0_43, %c2_44] : memref<8x8xf32, #tpu.memory_space<vmem>>, vector<8x1xf32>
    tpu.vector_store %arg6[%c0_43, %c2_44], %123 {strides = array<i32>} : memref<8x8xf32, #tpu.memory_space<vmem>>, vector<8x1xf32>,
    %c3 = arith.constant 3 : index
    %c0_45 = arith.constant 0 : index
    %c0_46 = arith.constant 0 : index
    %125 = vector.load %arg1[%c3, %c0_45, %c0_46] : memref<8x32x16xf32, #tpu.memory_space<vmem>>, vector<1x32x16xf32>
    %126 = vector.shape_cast %125 : vector<1x32x16xf32> to vector<32x16xf32>
    %127 = arith.mulf %126, %126 : vector<32x16xf32>
    %cst_47 = arith.constant dense<0.000000e+00> : vector<16xf32>
    %128 = vector.multi_reduction <add>, %127, %cst_47 [0] : vector<32x16xf32> to vector<16xf32>
    %129 = vector.shape_cast %128 : vector<16xf32> to vector<1x16xf32>
    %cst_48 = arith.constant 1.000000e-24 : f32
    %130 = vector.broadcast %cst_48 : f32 to vector<1x16xf32>
    %131 = arith.maximumf %129, %130 : vector<1x16xf32>
    %132 = math.rsqrt %131 : vector<1x16xf32>
    %133 = vector.broadcast %132 : vector<1x16xf32> to vector<32x16xf32>
    %134 = arith.mulf %126, %133 : vector<32x16xf32>
    %cst_49 = arith.constant dense<0.000000e+00> : vector<16x16xf32>
    %135 = tpu.matmul %0, %134, %cst_49 {dimension_numbers = #tpu.dot_dimension_numbers<[1], [0], [0], [1], [0, 0, 1, 1], [], []>} : vector<16x32xf32>, vector<32x16xf32>, vector<16x16xf32> -> vector<16x16xf32>
    %136 = vector.extract_strided_slice %135 {offsets = [0, 0], sizes = [8, 16], strides = [1, 1]} : vector<16x16xf32> to vector<8x16xf32>
    %137 = vector.extract_strided_slice %135 {offsets = [8, 0], sizes = [8, 16], strides = [1, 1]} : vector<16x16xf32> to vector<8x16xf32>
    %cst_50 = arith.constant dense<0xFF800000> : vector<8xf32>
    %138 = vector.multi_reduction <maximumf>, %137, %cst_50 [1] : vector<8x16xf32> to vector<8xf32>
    %139 = vector.shape_cast %138 : vector<8xf32> to vector<8x1xf32>
    %140 = vector.broadcast %139 : vector<8x1xf32> to vector<8x16xf32>
    %141 = arith.subf %137, %140 : vector<8x16xf32>
    %142 = math.exp %141 : vector<8x16xf32>
    %cst_51 = arith.constant dense<0.000000e+00> : vector<8xf32>
    %143 = vector.multi_reduction <add>, %142, %cst_51 [1] : vector<8x16xf32> to vector<8xf32>
    %144 = vector.shape_cast %143 : vector<8xf32> to vector<8x1xf32>
    %145 = tpu.reciprocal %144 {approx = true} : vector<8x1xf32> -> vector<8x1xf32>
    %146 = arith.mulf %144, %145 : vector<8x1xf32>
    %cst_52 = arith.constant 2.000000e+00 : f32
    %147 = vector.broadcast %cst_52 : f32 to vector<8x1xf32>
    %148 = arith.subf %147, %146 : vector<8x1xf32>
    %149 = arith.mulf %145, %148 : vector<8x1xf32>
    %150 = vector.broadcast %149 : vector<8x1xf32> to vector<8x16xf32>
    %151 = arith.mulf %142, %150 : vector<8x16xf32>
    %cst_53 = arith.constant dense<0.000000e+00> : vector<8x32xf32>
    %152 = tpu.matmul %151, %134, %cst_53 {dimension_numbers = #tpu.dot_dimension_numbers<[1], [1], [0], [0], [0, 0, 1, 0], [], []>} : vector<8x16xf32>, vector<32x16xf32>, vector<8x32xf32> -> vector<8x32xf32>
    %153 = arith.mulf %151, %136 : vector<8x16xf32>
    %cst_54 = arith.constant dense<0.000000e+00> : vector<8xf32>
    %154 = vector.multi_reduction <add>, %153, %cst_54 [1] : vector<8x16xf32> to vector<8xf32>
    %155 = vector.shape_cast %154 : vector<8xf32> to vector<8x1xf32>
    %156 = arith.mulf %1, %152 : vector<8x32xf32>
    %cst_55 = arith.constant dense<0.000000e+00> : vector<8xf32>
    %157 = vector.multi_reduction <add>, %156, %cst_55 [1] : vector<8x32xf32> to vector<8xf32>
    %158 = vector.shape_cast %157 : vector<8xf32> to vector<8x1xf32>
    %159 = arith.negf %158 : vector<8x1xf32>
    %160 = math.exp %159 : vector<8x1xf32>
    %cst_56 = arith.constant 1.000000e+00 : f32
    %161 = vector.broadcast %cst_56 : f32 to vector<8x1xf32>
    %162 = arith.addf %161, %160 : vector<8x1xf32>
    %163 = arith.divf %161, %162 : vector<8x1xf32>
    %164 = arith.mulf %163, %155 : vector<8x1xf32>
    %c0_57 = arith.constant 0 : index
    %c3_58 = arith.constant 3 : index
    %165 = vector.load %arg6[%c0_57, %c3_58] : memref<8x8xf32, #tpu.memory_space<vmem>>, vector<8x1xf32>
    tpu.vector_store %arg6[%c0_57, %c3_58], %164 {strides = array<i32>} : memref<8x8xf32, #tpu.memory_space<vmem>>, vector<8x1xf32>,
    %c4 = arith.constant 4 : index
    %c0_59 = arith.constant 0 : index
    %c0_60 = arith.constant 0 : index
    %166 = vector.load %arg1[%c4, %c0_59, %c0_60] : memref<8x32x16xf32, #tpu.memory_space<vmem>>, vector<1x32x16xf32>
    %167 = vector.shape_cast %166 : vector<1x32x16xf32> to vector<32x16xf32>
    %168 = arith.mulf %167, %167 : vector<32x16xf32>
    %cst_61 = arith.constant dense<0.000000e+00> : vector<16xf32>
    %169 = vector.multi_reduction <add>, %168, %cst_61 [0] : vector<32x16xf32> to vector<16xf32>
    %170 = vector.shape_cast %169 : vector<16xf32> to vector<1x16xf32>
    %cst_62 = arith.constant 1.000000e-24 : f32
    %171 = vector.broadcast %cst_62 : f32 to vector<1x16xf32>
    %172 = arith.maximumf %170, %171 : vector<1x16xf32>
    %173 = math.rsqrt %172 : vector<1x16xf32>
    %174 = vector.broadcast %173 : vector<1x16xf32> to vector<32x16xf32>
    %175 = arith.mulf %167, %174 : vector<32x16xf32>
    %cst_63 = arith.constant dense<0.000000e+00> : vector<16x16xf32>
    %176 = tpu.matmul %0, %175, %cst_63 {dimension_numbers = #tpu.dot_dimension_numbers<[1], [0], [0], [1], [0, 0, 1, 1], [], []>} : vector<16x32xf32>, vector<32x16xf32>, vector<16x16xf32> -> vector<16x16xf32>
    %177 = vector.extract_strided_slice %176 {offsets = [0, 0], sizes = [8, 16], strides = [1, 1]} : vector<16x16xf32> to vector<8x16xf32>
    %178 = vector.extract_strided_slice %176 {offsets = [8, 0], sizes = [8, 16], strides = [1, 1]} : vector<16x16xf32> to vector<8x16xf32>
    %cst_64 = arith.constant dense<0xFF800000> : vector<8xf32>
    %179 = vector.multi_reduction <maximumf>, %178, %cst_64 [1] : vector<8x16xf32> to vector<8xf32>
    %180 = vector.shape_cast %179 : vector<8xf32> to vector<8x1xf32>
    %181 = vector.broadcast %180 : vector<8x1xf32> to vector<8x16xf32>
    %182 = arith.subf %178, %181 : vector<8x16xf32>
    %183 = math.exp %182 : vector<8x16xf32>
    %cst_65 = arith.constant dense<0.000000e+00> : vector<8xf32>
    %184 = vector.multi_reduction <add>, %183, %cst_65 [1] : vector<8x16xf32> to vector<8xf32>
    %185 = vector.shape_cast %184 : vector<8xf32> to vector<8x1xf32>
    %186 = tpu.reciprocal %185 {approx = true} : vector<8x1xf32> -> vector<8x1xf32>
    %187 = arith.mulf %185, %186 : vector<8x1xf32>
    %cst_66 = arith.constant 2.000000e+00 : f32
    %188 = vector.broadcast %cst_66 : f32 to vector<8x1xf32>
    %189 = arith.subf %188, %187 : vector<8x1xf32>
    %190 = arith.mulf %186, %189 : vector<8x1xf32>
    %191 = vector.broadcast %190 : vector<8x1xf32> to vector<8x16xf32>
    %192 = arith.mulf %183, %191 : vector<8x16xf32>
    %cst_67 = arith.constant dense<0.000000e+00> : vector<8x32xf32>
    %193 = tpu.matmul %192, %175, %cst_67 {dimension_numbers = #tpu.dot_dimension_numbers<[1], [1], [0], [0], [0, 0, 1, 0], [], []>} : vector<8x16xf32>, vector<32x16xf32>, vector<8x32xf32> -> vector<8x32xf32>
    %194 = arith.mulf %192, %177 : vector<8x16xf32>
    %cst_68 = arith.constant dense<0.000000e+00> : vector<8xf32>
    %195 = vector.multi_reduction <add>, %194, %cst_68 [1] : vector<8x16xf32> to vector<8xf32>
    %196 = vector.shape_cast %195 : vector<8xf32> to vector<8x1xf32>
    %197 = arith.mulf %1, %193 : vector<8x32xf32>
    %cst_69 = arith.constant dense<0.000000e+00> : vector<8xf32>
    %198 = vector.multi_reduction <add>, %197, %cst_69 [1] : vector<8x32xf32> to vector<8xf32>
    %199 = vector.shape_cast %198 : vector<8xf32> to vector<8x1xf32>
    %200 = arith.negf %199 : vector<8x1xf32>
    %201 = math.exp %200 : vector<8x1xf32>
    %cst_70 = arith.constant 1.000000e+00 : f32
    %202 = vector.broadcast %cst_70 : f32 to vector<8x1xf32>
    %203 = arith.addf %202, %201 : vector<8x1xf32>
    %204 = arith.divf %202, %203 : vector<8x1xf32>
    %205 = arith.mulf %204, %196 : vector<8x1xf32>
    %c0_71 = arith.constant 0 : index
    %c4_72 = arith.constant 4 : index
    %206 = vector.load %arg6[%c0_71, %c4_72] : memref<8x8xf32, #tpu.memory_space<vmem>>, vector<8x1xf32>
    tpu.vector_store %arg6[%c0_71, %c4_72], %205 {strides = array<i32>} : memref<8x8xf32, #tpu.memory_space<vmem>>, vector<8x1xf32>,
    %c5 = arith.constant 5 : index
    %c0_73 = arith.constant 0 : index
    %c0_74 = arith.constant 0 : index
    %207 = vector.load %arg1[%c5, %c0_73, %c0_74] : memref<8x32x16xf32, #tpu.memory_space<vmem>>, vector<1x32x16xf32>
    %208 = vector.shape_cast %207 : vector<1x32x16xf32> to vector<32x16xf32>
    %209 = arith.mulf %208, %208 : vector<32x16xf32>
    %cst_75 = arith.constant dense<0.000000e+00> : vector<16xf32>
    %210 = vector.multi_reduction <add>, %209, %cst_75 [0] : vector<32x16xf32> to vector<16xf32>
    %211 = vector.shape_cast %210 : vector<16xf32> to vector<1x16xf32>
    %cst_76 = arith.constant 1.000000e-24 : f32
    %212 = vector.broadcast %cst_76 : f32 to vector<1x16xf32>
    %213 = arith.maximumf %211, %212 : vector<1x16xf32>
    %214 = math.rsqrt %213 : vector<1x16xf32>
    %215 = vector.broadcast %214 : vector<1x16xf32> to vector<32x16xf32>
    %216 = arith.mulf %208, %215 : vector<32x16xf32>
    %cst_77 = arith.constant dense<0.000000e+00> : vector<16x16xf32>
    %217 = tpu.matmul %0, %216, %cst_77 {dimension_numbers = #tpu.dot_dimension_numbers<[1], [0], [0], [1], [0, 0, 1, 1], [], []>} : vector<16x32xf32>, vector<32x16xf32>, vector<16x16xf32> -> vector<16x16xf32>
    %218 = vector.extract_strided_slice %217 {offsets = [0, 0], sizes = [8, 16], strides = [1, 1]} : vector<16x16xf32> to vector<8x16xf32>
    %219 = vector.extract_strided_slice %217 {offsets = [8, 0], sizes = [8, 16], strides = [1, 1]} : vector<16x16xf32> to vector<8x16xf32>
    %cst_78 = arith.constant dense<0xFF800000> : vector<8xf32>
    %220 = vector.multi_reduction <maximumf>, %219, %cst_78 [1] : vector<8x16xf32> to vector<8xf32>
    %221 = vector.shape_cast %220 : vector<8xf32> to vector<8x1xf32>
    %222 = vector.broadcast %221 : vector<8x1xf32> to vector<8x16xf32>
    %223 = arith.subf %219, %222 : vector<8x16xf32>
    %224 = math.exp %223 : vector<8x16xf32>
    %cst_79 = arith.constant dense<0.000000e+00> : vector<8xf32>
    %225 = vector.multi_reduction <add>, %224, %cst_79 [1] : vector<8x16xf32> to vector<8xf32>
    %226 = vector.shape_cast %225 : vector<8xf32> to vector<8x1xf32>
    %227 = tpu.reciprocal %226 {approx = true} : vector<8x1xf32> -> vector<8x1xf32>
    %228 = arith.mulf %226, %227 : vector<8x1xf32>
    %cst_80 = arith.constant 2.000000e+00 : f32
    %229 = vector.broadcast %cst_80 : f32 to vector<8x1xf32>
    %230 = arith.subf %229, %228 : vector<8x1xf32>
    %231 = arith.mulf %227, %230 : vector<8x1xf32>
    %232 = vector.broadcast %231 : vector<8x1xf32> to vector<8x16xf32>
    %233 = arith.mulf %224, %232 : vector<8x16xf32>
    %cst_81 = arith.constant dense<0.000000e+00> : vector<8x32xf32>
    %234 = tpu.matmul %233, %216, %cst_81 {dimension_numbers = #tpu.dot_dimension_numbers<[1], [1], [0], [0], [0, 0, 1, 0], [], []>} : vector<8x16xf32>, vector<32x16xf32>, vector<8x32xf32> -> vector<8x32xf32>
    %235 = arith.mulf %233, %218 : vector<8x16xf32>
    %cst_82 = arith.constant dense<0.000000e+00> : vector<8xf32>
    %236 = vector.multi_reduction <add>, %235, %cst_82 [1] : vector<8x16xf32> to vector<8xf32>
    %237 = vector.shape_cast %236 : vector<8xf32> to vector<8x1xf32>
    %238 = arith.mulf %1, %234 : vector<8x32xf32>
    %cst_83 = arith.constant dense<0.000000e+00> : vector<8xf32>
    %239 = vector.multi_reduction <add>, %238, %cst_83 [1] : vector<8x32xf32> to vector<8xf32>
    %240 = vector.shape_cast %239 : vector<8xf32> to vector<8x1xf32>
    %241 = arith.negf %240 : vector<8x1xf32>
    %242 = math.exp %241 : vector<8x1xf32>
    %cst_84 = arith.constant 1.000000e+00 : f32
    %243 = vector.broadcast %cst_84 : f32 to vector<8x1xf32>
    %244 = arith.addf %243, %242 : vector<8x1xf32>
    %245 = arith.divf %243, %244 : vector<8x1xf32>
    %246 = arith.mulf %245, %237 : vector<8x1xf32>
    %c0_85 = arith.constant 0 : index
    %c5_86 = arith.constant 5 : index
    %247 = vector.load %arg6[%c0_85, %c5_86] : memref<8x8xf32, #tpu.memory_space<vmem>>, vector<8x1xf32>
    tpu.vector_store %arg6[%c0_85, %c5_86], %246 {strides = array<i32>} : memref<8x8xf32, #tpu.memory_space<vmem>>, vector<8x1xf32>,
    %c6 = arith.constant 6 : index
    %c0_87 = arith.constant 0 : index
    %c0_88 = arith.constant 0 : index
    %248 = vector.load %arg1[%c6, %c0_87, %c0_88] : memref<8x32x16xf32, #tpu.memory_space<vmem>>, vector<1x32x16xf32>
    %249 = vector.shape_cast %248 : vector<1x32x16xf32> to vector<32x16xf32>
    %250 = arith.mulf %249, %249 : vector<32x16xf32>
    %cst_89 = arith.constant dense<0.000000e+00> : vector<16xf32>
    %251 = vector.multi_reduction <add>, %250, %cst_89 [0] : vector<32x16xf32> to vector<16xf32>
    %252 = vector.shape_cast %251 : vector<16xf32> to vector<1x16xf32>
    %cst_90 = arith.constant 1.000000e-24 : f32
    %253 = vector.broadcast %cst_90 : f32 to vector<1x16xf32>
    %254 = arith.maximumf %252, %253 : vector<1x16xf32>
    %255 = math.rsqrt %254 : vector<1x16xf32>
    %256 = vector.broadcast %255 : vector<1x16xf32> to vector<32x16xf32>
    %257 = arith.mulf %249, %256 : vector<32x16xf32>
    %cst_91 = arith.constant dense<0.000000e+00> : vector<16x16xf32>
    %258 = tpu.matmul %0, %257, %cst_91 {dimension_numbers = #tpu.dot_dimension_numbers<[1], [0], [0], [1], [0, 0, 1, 1], [], []>} : vector<16x32xf32>, vector<32x16xf32>, vector<16x16xf32> -> vector<16x16xf32>
    %259 = vector.extract_strided_slice %258 {offsets = [0, 0], sizes = [8, 16], strides = [1, 1]} : vector<16x16xf32> to vector<8x16xf32>
    %260 = vector.extract_strided_slice %258 {offsets = [8, 0], sizes = [8, 16], strides = [1, 1]} : vector<16x16xf32> to vector<8x16xf32>
    %cst_92 = arith.constant dense<0xFF800000> : vector<8xf32>
    %261 = vector.multi_reduction <maximumf>, %260, %cst_92 [1] : vector<8x16xf32> to vector<8xf32>
    %262 = vector.shape_cast %261 : vector<8xf32> to vector<8x1xf32>
    %263 = vector.broadcast %262 : vector<8x1xf32> to vector<8x16xf32>
    %264 = arith.subf %260, %263 : vector<8x16xf32>
    %265 = math.exp %264 : vector<8x16xf32>
    %cst_93 = arith.constant dense<0.000000e+00> : vector<8xf32>
    %266 = vector.multi_reduction <add>, %265, %cst_93 [1] : vector<8x16xf32> to vector<8xf32>
    %267 = vector.shape_cast %266 : vector<8xf32> to vector<8x1xf32>
    %268 = tpu.reciprocal %267 {approx = true} : vector<8x1xf32> -> vector<8x1xf32>
    %269 = arith.mulf %267, %268 : vector<8x1xf32>
    %cst_94 = arith.constant 2.000000e+00 : f32
    %270 = vector.broadcast %cst_94 : f32 to vector<8x1xf32>
    %271 = arith.subf %270, %269 : vector<8x1xf32>
    %272 = arith.mulf %268, %271 : vector<8x1xf32>
    %273 = vector.broadcast %272 : vector<8x1xf32> to vector<8x16xf32>
    %274 = arith.mulf %265, %273 : vector<8x16xf32>
    %cst_95 = arith.constant dense<0.000000e+00> : vector<8x32xf32>
    %275 = tpu.matmul %274, %257, %cst_95 {dimension_numbers = #tpu.dot_dimension_numbers<[1], [1], [0], [0], [0, 0, 1, 0], [], []>} : vector<8x16xf32>, vector<32x16xf32>, vector<8x32xf32> -> vector<8x32xf32>
    %276 = arith.mulf %274, %259 : vector<8x16xf32>
    %cst_96 = arith.constant dense<0.000000e+00> : vector<8xf32>
    %277 = vector.multi_reduction <add>, %276, %cst_96 [1] : vector<8x16xf32> to vector<8xf32>
    %278 = vector.shape_cast %277 : vector<8xf32> to vector<8x1xf32>
    %279 = arith.mulf %1, %275 : vector<8x32xf32>
    %cst_97 = arith.constant dense<0.000000e+00> : vector<8xf32>
    %280 = vector.multi_reduction <add>, %279, %cst_97 [1] : vector<8x32xf32> to vector<8xf32>
    %281 = vector.shape_cast %280 : vector<8xf32> to vector<8x1xf32>
    %282 = arith.negf %281 : vector<8x1xf32>
    %283 = math.exp %282 : vector<8x1xf32>
    %cst_98 = arith.constant 1.000000e+00 : f32
    %284 = vector.broadcast %cst_98 : f32 to vector<8x1xf32>
    %285 = arith.addf %284, %283 : vector<8x1xf32>
    %286 = arith.divf %284, %285 : vector<8x1xf32>
    %287 = arith.mulf %286, %278 : vector<8x1xf32>
    %c0_99 = arith.constant 0 : index
    %c6_100 = arith.constant 6 : index
    %288 = vector.load %arg6[%c0_99, %c6_100] : memref<8x8xf32, #tpu.memory_space<vmem>>, vector<8x1xf32>
    tpu.vector_store %arg6[%c0_99, %c6_100], %287 {strides = array<i32>} : memref<8x8xf32, #tpu.memory_space<vmem>>, vector<8x1xf32>,
    %c7 = arith.constant 7 : index
    %c0_101 = arith.constant 0 : index
    %c0_102 = arith.constant 0 : index
    %289 = vector.load %arg1[%c7, %c0_101, %c0_102] : memref<8x32x16xf32, #tpu.memory_space<vmem>>, vector<1x32x16xf32>
    %290 = vector.shape_cast %289 : vector<1x32x16xf32> to vector<32x16xf32>
    %291 = arith.mulf %290, %290 : vector<32x16xf32>
    %cst_103 = arith.constant dense<0.000000e+00> : vector<16xf32>
    %292 = vector.multi_reduction <add>, %291, %cst_103 [0] : vector<32x16xf32> to vector<16xf32>
    %293 = vector.shape_cast %292 : vector<16xf32> to vector<1x16xf32>
    %cst_104 = arith.constant 1.000000e-24 : f32
    %294 = vector.broadcast %cst_104 : f32 to vector<1x16xf32>
    %295 = arith.maximumf %293, %294 : vector<1x16xf32>
    %296 = math.rsqrt %295 : vector<1x16xf32>
    %297 = vector.broadcast %296 : vector<1x16xf32> to vector<32x16xf32>
    %298 = arith.mulf %290, %297 : vector<32x16xf32>
    %cst_105 = arith.constant dense<0.000000e+00> : vector<16x16xf32>
    %299 = tpu.matmul %0, %298, %cst_105 {dimension_numbers = #tpu.dot_dimension_numbers<[1], [0], [0], [1], [0, 0, 1, 1], [], []>} : vector<16x32xf32>, vector<32x16xf32>, vector<16x16xf32> -> vector<16x16xf32>
    %300 = vector.extract_strided_slice %299 {offsets = [0, 0], sizes = [8, 16], strides = [1, 1]} : vector<16x16xf32> to vector<8x16xf32>
    %301 = vector.extract_strided_slice %299 {offsets = [8, 0], sizes = [8, 16], strides = [1, 1]} : vector<16x16xf32> to vector<8x16xf32>
    %cst_106 = arith.constant dense<0xFF800000> : vector<8xf32>
    %302 = vector.multi_reduction <maximumf>, %301, %cst_106 [1] : vector<8x16xf32> to vector<8xf32>
    %303 = vector.shape_cast %302 : vector<8xf32> to vector<8x1xf32>
    %304 = vector.broadcast %303 : vector<8x1xf32> to vector<8x16xf32>
    %305 = arith.subf %301, %304 : vector<8x16xf32>
    %306 = math.exp %305 : vector<8x16xf32>
    %cst_107 = arith.constant dense<0.000000e+00> : vector<8xf32>
    %307 = vector.multi_reduction <add>, %306, %cst_107 [1] : vector<8x16xf32> to vector<8xf32>
    %308 = vector.shape_cast %307 : vector<8xf32> to vector<8x1xf32>
    %309 = tpu.reciprocal %308 {approx = true} : vector<8x1xf32> -> vector<8x1xf32>
    %310 = arith.mulf %308, %309 : vector<8x1xf32>
    %cst_108 = arith.constant 2.000000e+00 : f32
    %311 = vector.broadcast %cst_108 : f32 to vector<8x1xf32>
    %312 = arith.subf %311, %310 : vector<8x1xf32>
    %313 = arith.mulf %309, %312 : vector<8x1xf32>
    %314 = vector.broadcast %313 : vector<8x1xf32> to vector<8x16xf32>
    %315 = arith.mulf %306, %314 : vector<8x16xf32>
    %cst_109 = arith.constant dense<0.000000e+00> : vector<8x32xf32>
    %316 = tpu.matmul %315, %298, %cst_109 {dimension_numbers = #tpu.dot_dimension_numbers<[1], [1], [0], [0], [0, 0, 1, 0], [], []>} : vector<8x16xf32>, vector<32x16xf32>, vector<8x32xf32> -> vector<8x32xf32>
    %317 = arith.mulf %315, %300 : vector<8x16xf32>
    %cst_110 = arith.constant dense<0.000000e+00> : vector<8xf32>
    %318 = vector.multi_reduction <add>, %317, %cst_110 [1] : vector<8x16xf32> to vector<8xf32>
    %319 = vector.shape_cast %318 : vector<8xf32> to vector<8x1xf32>
    %320 = arith.mulf %1, %316 : vector<8x32xf32>
    %cst_111 = arith.constant dense<0.000000e+00> : vector<8xf32>
    %321 = vector.multi_reduction <add>, %320, %cst_111 [1] : vector<8x32xf32> to vector<8xf32>
    %322 = vector.shape_cast %321 : vector<8xf32> to vector<8x1xf32>
    %323 = arith.negf %322 : vector<8x1xf32>
    %324 = math.exp %323 : vector<8x1xf32>
    %cst_112 = arith.constant 1.000000e+00 : f32
    %325 = vector.broadcast %cst_112 : f32 to vector<8x1xf32>
    %326 = arith.addf %325, %324 : vector<8x1xf32>
    %327 = arith.divf %325, %326 : vector<8x1xf32>
    %328 = arith.mulf %327, %319 : vector<8x1xf32>
    %c0_113 = arith.constant 0 : index
    %c7_114 = arith.constant 7 : index
    %329 = vector.load %arg6[%c0_113, %c7_114] : memref<8x8xf32, #tpu.memory_space<vmem>>, vector<8x1xf32>
    tpu.vector_store %arg6[%c0_113, %c7_114], %328 {strides = array<i32>} : memref<8x8xf32, #tpu.memory_space<vmem>>, vector<8x1xf32>,
    %c0_115 = arith.constant 0 : index
    %c0_116 = arith.constant 0 : index
    %330 = vector.load %arg6[%c0_115, %c0_116] : memref<8x8xf32, #tpu.memory_space<vmem>>, vector<8x8xf32>
    %c0_117 = arith.constant 0 : index
    %c0_118 = arith.constant 0 : index
    %331 = vector.load %arg4[%c0_117, %c0_118] : memref<8x128xf32, #tpu.memory_space<vmem>>, vector<8x128xf32>
    %cst_119 = arith.constant dense<0.000000e+00> : vector<8x128xf32>
    %332 = tpu.matmul %330, %331, %cst_119 {dimension_numbers = #tpu.dot_dimension_numbers<[0], [0], [1], [1], [0, 1, 1, 1], [], []>} : vector<8x8xf32>, vector<8x128xf32>, vector<8x128xf32> -> vector<8x128xf32>
    %c0_120 = arith.constant 0 : index
    %c0_121 = arith.constant 0 : index
    %333 = vector.load %arg5[%c0_120, %c0_121] : memref<8x128xf32, #tpu.memory_space<vmem>>, vector<8x128xf32>
    tpu.vector_store %arg5[%c0_120, %c0_121], %332 {strides = array<i32>} : memref<8x128xf32, #tpu.memory_space<vmem>>, vector<8x128xf32>,
    return
  }
  func.func @transform_0(%arg0: i32) -> (i32, i32, i32) {
    %c0_i32 = arith.constant 0 : i32
    %c0_i32_0 = arith.constant 0 : i32
    %c0_i32_1 = arith.constant 0 : i32
    return %arg0, %c0_i32, %c0_i32_0 : i32, i32, i32
  }
  func.func @transform_1(%arg0: i32) -> (i32, i32) {
    %c0_i32 = arith.constant 0 : i32
    %c0_i32_0 = arith.constant 0 : i32
    %c0_i32_1 = arith.constant 0 : i32
    return %c0_i32, %c0_i32_0 : i32, i32
  }
  func.func @transform_2(%arg0: i32) -> (i32, i32) {
    %c0_i32 = arith.constant 0 : i32
    %c0_i32_0 = arith.constant 0 : i32
    %c0_i32_1 = arith.constant 0 : i32
    return %c0_i32, %c0_i32_0 : i32, i32
  }
  func.func @transform_3(%arg0: i32) -> (i32, i32) {
    %c0_i32 = arith.constant 0 : i32
    %c0_i32_0 = arith.constant 0 : i32
    %c0_i32_1 = arith.constant 0 : i32
    return %c0_i32, %c0_i32_0 : i32, i32
  }
  func.func @transform_4(%arg0: i32) -> (i32, i32) {
    %c0_i32 = arith.constant 0 : i32
    %c0_i32_0 = arith.constant 0 : i32
    return %arg0, %c0_i32 : i32, i32
  }
}

</mosaic_0001>

<bundles_post_ra>
// kernel: tpu_custom_call.1
= control target key start
LH: loop header
LB: loop body
LE: loop exit
PB: predicated region body
PF: predicated region fallthrough
CT: control target
= control target key end

     0   :  { %vm29_vm0 = vcmask 130048   ;;  %vm49_vm1 = vcmask 261120   ;;  %s2937_s0 = inlined_call_operand.vmem [shape: f32[8,32,16], index: 0, kind: input, shape index: {}]   ;;  %s2938_s1 = inlined_call_operand.vmem [shape: f32[16,32], index: 1, kind: input, shape index: {}]   ;;  %s2939_s2 = inlined_call_operand.vmem [shape: f32[8,32], index: 2, kind: input, shape index: {}]   ;;  %s2940_s3 = inlined_call_operand.vmem [shape: f32[8,128], index: 3, kind: input, shape index: {}]   ;;  %s2941_s4 = inlined_call_operand.hbm [shape: f32[8,128], index: 4, kind: output, shape index: {}]  }
   0x1   :  { %v21_v0 = vld [vmem:[%s2937_s0] sm:$0xff]  ;;  %v22_v1 = vld [vmem:[%s2937_s0 + $0x8] sm:$0xff]  ;;  %v23_v2 = vld [vmem:[%s2937_s0 + $0x10] sm:$0xff] }
   0x2   :  { %v24_v3 = vld [vmem:[%s2937_s0 + $0x18] sm:$0xff]  ;;  %v25_v4 = vmul.f32 %v21_v0, %v21_v0  ;;  %v26_v5 = vmul.f32 %v22_v1, %v22_v1  ;;  %v27_v6 = vmul.f32 %v23_v2, %v23_v2  ;;  %v1911_v7 = vld [vmem:[%s2937_s0 + $0x20] sm:$0xff]  ;;  %v1912_v8 = vld [vmem:[%s2937_s0 + $0x28] sm:$0xff] }
   0x3   :  { %v28_v9 = vmul.f32 %v24_v3, %v24_v3  ;;  %v1913_v10 = vld [vmem:[%s2937_s0 + $0x30] sm:$0xff]  ;;  %v1914_v11 = vld [vmem:[%s2937_s0 + $0x38] sm:$0xff]  ;;  %v252_v12 = vmul.f32 %v1911_v7, %v1911_v7  ;;  %v253_v13 = vmul.f32 %v1912_v8, %v1912_v8  ;;  %v2559_v14 = vld [vmem:[%s2938_s1] sm:$0xff] }
   0x4   :  { %v30_v15 = vsel %vm29_vm0, %v25_v4, 0.0  ;;  %v31_v16 = vsel %vm29_vm0, %v26_v5, 0.0  ;;  %v33_v17 = vsel %vm29_vm0, %v27_v6, 0.0  ;;  %v254_v18 = vmul.f32 %v1913_v10, %v1913_v10  ;;  %2094 = vmatprep.mubr.msk.f32.mxu1 %vm49_vm1, %v2559_v14  ;;  %2116 = vmatprep.mubr.msk.f32.mxu0 %vm49_vm1, %v2559_v14 }
   0x5   :  { %9 = vsyncpa [#allocation4], 0  ;;  %v32_v19 = vadd.f32 %v31_v16, %v30_v15  ;;  %v255_v20 = vmul.f32 %v1914_v11, %v1914_v11  ;;  %v256_v21 = vsel %vm29_vm0, %v252_v12, 0.0  ;;  %v35_v22 = vsel %vm29_vm0, %v28_v9, 0.0  ;;  %v2591_v59 = vld [vmem:[%s2938_s1 + $0x8] sm:$0xff]  ;;  %v2621_v12 = vld [vmem:[%s2937_s0 + $0x50] sm:$0xff] }
   0x6   :  { %v257_v23 = vsel %vm29_vm0, %v253_v13, 0.0  ;;  %v259_v24 = vsel %vm29_vm0, %v254_v18, 0.0  ;;  %v2612_v9 = vld [vmem:[%s2937_s0 + $0x48] sm:$0xff]  ;;  %v473_v13 = vmul.f32 %v2621_v12, %v2621_v12  ;;  %vm2663_vm2 = vmpackc.low %vm29_vm0, %vm29_vm0  ;;  %vm2504_vm3 = vmmov 0  }
   0x7   :  { %v34_v25 = vadd.f32 %v33_v17, %v32_v19  ;;  %v258_v26 = vadd.f32 %v257_v23, %v256_v21  ;;  %v261_v27 = vsel %vm29_vm0, %v255_v20, 0.0  ;;  %v2630_v17 = vld [vmem:[%s2937_s0 + $0x58] sm:$0xff]  ;;  %v1936_v23 = vld [vmem:[%s2937_s0 + $0x68] sm:$0xff]  ;;  %vm245_vm4 = vcmask 7168  }
   0x8   :  { %v474_v20 = vmul.f32 %v2630_v17, %v2630_v17  ;;  %v478_v21 = vsel %vm29_vm0, %v473_v13, 0.0  ;;  %vm464_vm5 = vcmask 15368   ;;  %vm683_vm6 = vcmask 23568  }
   0x9   :  { %v36_v28 = vadd.f32 %v35_v22, %v34_v25  ;;  %v260_v29 = vadd.f32 %v259_v24, %v258_v26  ;;  %v1935_v22 = vld [vmem:[%s2937_s0 + $0x60] sm:$0xff]  ;;  %vm902_vm7 = vcmask 31768   ;;  %vm1121_vm8 = vcmask 39968  }
   0xa   :  { %v690_v26 = vmul.f32 %v1935_v22, %v1935_v22  ;;  %vm1340_vm9 = vcmask 48168   ;;  %vm1559_vm10 = vcmask 56368   ;;  %vm1778_vm11 = vcmask 64568  }
   0xb   :  { %v37_v30 = vrot.slane %v36_v28, 4  ;;  %v262_v31 = vadd.f32 %v261_v27, %v260_v29  ;;  %v691_v27 = vmul.f32 %v1936_v23, %v1936_v23  ;;  %v1937_v29 = vld [vmem:[%s2937_s0 + $0x70] sm:$0xff]  ;;  %vm1814_vm12 = vcmask 64512  }
   0xd   :  { %v38_v32 = vadd.f32 %v37_v30, %v36_v28  ;;  %v263_v33 = vrot.slane %v262_v31, 4  ;;  %v480_v28 = vsel %vm29_vm0, %v474_v20, 0.0 }
   0xf   :  { %v39_v34 = vrot.slane %v38_v32, 2  ;;  %v264_v35 = vadd.f32 %v263_v33, %v262_v31  ;;  %v692_v31 = vmul.f32 %v1937_v29, %v1937_v29  ;;  %v695_v33 = vsel %vm29_vm0, %v691_v27, 0.0 }
  0x11   :  { %v40_v36 = vadd.f32 %v39_v34, %v38_v32  ;;  %v265_v37 = vrot.slane %v264_v35, 2  ;;  %v694_v32 = vsel %vm29_vm0, %v690_v26, 0.0 }
  0x13   :  { %v41_v38 = vrot.slane %v40_v36, 1  ;;  %v266_v39 = vadd.f32 %v265_v37, %v264_v35  ;;  %v1938_v35 = vld [vmem:[%s2937_s0 + $0x78] sm:$0xff] }
  0x15   :  { %v42_v40 = vadd.f32 %v41_v38, %v40_v36  ;;  %v267_v41 = vrot.slane %v266_v39, 1  ;;  %v696_v36 = vadd.f32 %v695_v33, %v694_v32 }
  0x17   :  { %v43_v42 = vmax.f32 %v42_v40, 1e-24  ;;  %v268_v43 = vadd.f32 %v267_v41, %v266_v39  ;;  %v693_v39 = vmul.f32 %v1938_v35, %v1938_v35  ;;  %v697_v40 = vsel %vm29_vm0, %v692_v31, 0.0 }
  0x18   :  { %v698_v41 = vadd.f32 %v697_v40, %v696_v36 }
  0x19   :  { %2399 = vrsqrt.f32 %v43_v42  ;;  %v269_v44 = vmax.f32 %v268_v43, 1e-24  ;;  %v699_v43 = vsel %vm29_vm0, %v693_v39, 0.0 }
  0x1b   :  { %2401 = vrsqrt.f32 %v269_v44  ;;  %v700_v44 = vadd.f32 %v699_v43, %v698_v41  ;;  %v1948_v43 = vld [vmem:[%s2937_s0 + $0x88] sm:$0xff] }
  0x23   :  { %v2400_v45 = vpop.eup %2399 }
  0x24   :  { %v45_v46 = vmul.f32 %v2400_v45, %v21_v0  ;;  %v46_v47 = vmul.f32 %v2400_v45, %v22_v1  ;;  %v47_v48 = vmul.f32 %v2400_v45, %v23_v2  ;;  %v48_v49 = vmul.f32 %v2400_v45, %v24_v3 }
  0x25   :  { %v2402_v50 = vpop.eup %2401 }
  0x26   :  { %v2573_v51 = vpack.c.bf16 %v46_v47, %v45_v46  ;;  %v271_v52 = vmul.f32 %v2402_v50, %v1911_v7  ;;  %v272_v53 = vmul.f32 %v2402_v50, %v1912_v8  ;;  %v2575_v54 = vpack.c.bf16 %v48_v49, %v47_v48  ;;  %v2607_v8 = vld [vmem:[%s2937_s0 + $0x40] sm:$0xff] }
  0x27   :  { %v273_v55 = vmul.f32 %v2402_v50, %v1913_v10  ;;  %v274_v56 = vmul.f32 %v2402_v50, %v1914_v11  ;;  %v471_v10 = vmul.f32 %v2607_v8, %v2607_v8  ;;  %v472_v11 = vmul.f32 %v2612_v9, %v2612_v9 }
  0x28   :  { %2268 = vmatprep.subr.bf16.mxu1 %v2573_v51  ;;  %v2578_v57 = vpack.c.bf16 %v272_v53, %v271_v52  ;;  %v701_v46 = vrot.slane %v700_v44, 4 }
  0x29   :  { %2270 = vmatpush3.bf16.msra.mxu1 %v2573_v51  ;;  %v2581_v58 = vpack.c.bf16 %v274_v56, %v273_v55  ;;  %v475_v15 = vsel %vm29_vm0, %v471_v10, 0.0  ;;  %v476_v16 = vsel %vm29_vm0, %v472_v11, 0.0  ;;  %v2503_v56 = vmov 0.0|0.0  }
  0x2a   :  { %2284 = vmatprep.subr.bf16.mxu0 %v2578_v57  ;;  %2272 = vmatprep.subr.bf16.mxu1 %v2575_v54  ;;  %v477_v18 = vadd.f32 %v476_v16, %v475_v15  ;;  %v702_v48 = vadd.f32 %v701_v46, %v700_v44  ;;  %v1949_v46 = vld [vmem:[%s2937_s0 + $0x90] sm:$0xff] }
  0x2b   :  { %2286 = vmatpush3.bf16.msra.mxu0 %v2578_v57 }
  0x2c   :  { %2288 = vmatprep.subr.bf16.mxu0 %v2581_v58  ;;  %v479_v25 = vadd.f32 %v478_v21, %v477_v18  ;;  %v703_v50 = vrot.slane %v702_v48, 2 }
  0x2d   :  { %2274 = vmatpush3.bf16.msra.mxu1 %v2575_v54 }
  0x2e   :  { %v481_v30 = vadd.f32 %v480_v28, %v479_v25  ;;  %v704_v53 = vadd.f32 %v703_v50, %v702_v48  ;;  %2275 = vmatprep.subr.bf16.mxu1 %v2503_v56  ;;  %v1950_v50 = vld [vmem:[%s2937_s0 + $0x98] sm:$0xff] }
  0x2f   :  { %2290 = vmatpush3.bf16.msra.mxu0 %v2581_v58 }
  0x30   :  { %2095 = vmatmul.mubr.msk.f32.vlgmr.msra.gmra.mrb[0].mxu1 %vm49_vm1, %v2591_v59  ;;  %v482_v38 = vrot.slane %v481_v30, 4  ;;  %2291 = vmatprep.subr.bf16.mxu0 %v2503_v56 }
  0x32   :  { %2117 = vmatmul.mubr.msk.f32.vlgmr.msra.gmra.mrb[0].mxu0 %vm49_vm1, %v2591_v59  ;;  %v483_v42 = vadd.f32 %v482_v38, %v481_v30 }
  0x34   :  { %v484_v45 = vrot.slane %v483_v42, 2 }
  0x36   :  { %v485_v47 = vadd.f32 %v484_v45, %v483_v42  ;;  %2278 = vmatpush3.bf16.xpose.msk.msra.mxu1 %vm2663_vm2, %v2573_v51  ;;  %v1947_v42 = vld [vmem:[%s2937_s0 + $0x80] sm:$0xff]  ;;  %v910_v45 = vmul.f32 %v1948_v43, %v1948_v43 }
  0x37   :  { %2279 = vmatprep.subr.bf16.mxu1 %v2503_v56  ;;  %v909_v44 = vmul.f32 %v1947_v42, %v1947_v42 }
  0x38   :  { %v486_v49 = vrot.slane %v485_v47, 1  ;;  %2294 = vmatpush3.bf16.xpose.msk.msra.mxu0 %vm2663_vm2, %v2578_v57 }
  0x39   :  { %2295 = vmatprep.subr.bf16.mxu0 %v2503_v56  ;;  %v913_v48 = vsel %vm29_vm0, %v909_v44, 0.0 }
  0x3a   :  { %v487_v52 = vadd.f32 %v486_v49, %v485_v47  ;;  %v911_v47 = vmul.f32 %v1949_v46, %v1949_v46  ;;  %v914_v49 = vsel %vm29_vm0, %v910_v45, 0.0 }
  0x3c   :  { %v488_v55 = vmax.f32 %v487_v52, 1e-24  ;;  %v915_v52 = vadd.f32 %v914_v49, %v913_v48 }
  0x3e   :  { %2282 = vmatpush3.bf16.xpose.msk.msra.mxu1 %vm2663_vm2, %v2575_v54 }
  0x40   :  { %2298 = vmatpush3.bf16.xpose.msk.msra.mxu0 %vm2663_vm2, %v2581_v58 }
 0x103   :  { %v2096_v60 = vpop.f32.mrb[0].mxu1 }
 0x104   :  { %v2598_v61 = vpop.f32.mrb[1].mxu1  ;;  %v131_v62 = vsel %vm29_vm0, %v2096_v60, -inf }
 0x105   :  { %132 = vmax.xlane.f32.xlu0 %v131_v62  ;;  %v2118_v63 = vpop.f32.mrb[0].mxu0  ;;  %v705_v62 = vrot.slane %v704_v53, 1 }
 0x106   :  { %v2601_v0 = vpop.f32.mrb[1].mxu0  ;;  %v350_v1 = vsel %vm29_vm0, %v2118_v63, -inf }
 0x109   :  { %351 = vmax.xlane.f32.xlu0 %v350_v1 }
 0x192   :  { %v133_v2 = vpop.xlane.xlu0 %132 }
 0x193   :  { %v134_v3 = vsub.f32 %v2096_v60, %v133_v2 }
 0x195   :  { %v135_v4 = vmul.f32 1.442695, %v134_v3 }
 0x196   :  { %v352_v5 = vpop.xlane.xlu0 %351 }
 0x197   :  { %2403 = vpow2.f32 %v135_v4  ;;  %v353_v6 = vsub.f32 %v2118_v63, %v352_v5  ;;  %v706_v63 = vadd.f32 %v705_v62, %v704_v53  ;;  %v2505_v5 = vmov 0.0  }
 0x198   :  { %2105 = vmatprep.mubr.msk.f32.mxu1 %vm2504_vm3, %v2505_v5  ;;  %2127 = vmatprep.mubr.msk.f32.mxu0 %vm2504_vm3, %v2505_v5  ;;  %v916_v62 = vsel %vm29_vm0, %v911_v47, 0.0 }
 0x199   :  { %v354_v7 = vmul.f32 1.442695, %v353_v6  ;;  %v707_v1 = vmax.f32 %v706_v63, 1e-24  ;;  %v1959_v63 = vld [vmem:[%s2937_s0 + $0xa0] sm:$0xff] }
 0x19b   :  { %2405 = vpow2.f32 %v354_v7 }
 0x19c   :  { %2407 = vrsqrt.f32 %v488_v55  ;;  %v912_v55 = vmul.f32 %v1950_v50, %v1950_v50 }
 0x19d   :  { %2409 = vrsqrt.f32 %v707_v1  ;;  %v1960_v1 = vld [vmem:[%s2937_s0 + $0xa8] sm:$0xff] }
 0x1a1   :  { %v2632_v19 = vpop.eup %2403 }
 0x1a2   :  { %v137_v24 = vsel %vm29_vm0, %v2632_v19, 0.0 }
 0x1a3   :  { %138 = vadd.xlane.f32.xlu1 %v137_v24 }
 0x1a5   :  { %v2651_v34 = vpop.eup %2405 }
 0x1a6   :  { %v356_v37 = vsel %vm29_vm0, %v2651_v34, 0.0  ;;  %v2408_v51 = vpop.eup %2407 }
 0x1a7   :  { %357 = vadd.xlane.f32.xlu1 %v356_v37  ;;  %v490_v2 = vmul.f32 %v2408_v51, %v2607_v8  ;;  %v491_v57 = vmul.f32 %v2408_v51, %v2612_v9  ;;  %v2410_v4 = vpop.eup %2409  ;;  %v492_v54 = vmul.f32 %v2408_v51, %v2621_v12  ;;  %v493_v58 = vmul.f32 %v2408_v51, %v2630_v17 }
 0x1a8   :  { %v709_v6 = vmul.f32 %v2410_v4, %v1935_v22  ;;  %v710_v7 = vmul.f32 %v2410_v4, %v1936_v23  ;;  %v711_v9 = vmul.f32 %v2410_v4, %v1937_v29  ;;  %v712_v11 = vmul.f32 %v2410_v4, %v1938_v35 }
 0x1a9   :  { %v2299_v3 = vpack.c.bf16 %v491_v57, %v490_v2  ;;  %v2303_v8 = vpack.c.bf16 %v493_v58, %v492_v54  ;;  %v917_v2 = vadd.f32 %v916_v62, %v915_v52  ;;  %v1128_v57 = vmul.f32 %v1959_v63, %v1959_v63  ;;  %v1961_v54 = vld [vmem:[%s2937_s0 + $0xb0] sm:$0xff] }
 0x1aa   :  { %v2315_v10 = vpack.c.bf16 %v710_v7, %v709_v6  ;;  %v2319_v13 = vpack.c.bf16 %v712_v11, %v711_v9  ;;  %v918_v4 = vsel %vm29_vm0, %v912_v55, 0.0  ;;  %v1130_v6 = vmul.f32 %v1961_v54, %v1961_v54  ;;  %v1962_v9 = vld [vmem:[%s2937_s0 + $0xb8] sm:$0xff] }
 0x1ab   :  { %2300 = vmatprep.subr.bf16.mxu1 %v2299_v3  ;;  %v919_v58 = vadd.f32 %v918_v4, %v917_v2  ;;  %v1132_v7 = vsel %vm29_vm0, %v1128_v57, 0.0 }
 0x1ac   :  { %2316 = vmatprep.subr.bf16.mxu0 %v2315_v10 }
 0x230   :  { %v139_v15 = vpop.xlane.xlu1 %138 }
 0x231   :  { %2411 = vrcp.f32 %v139_v15 }
 0x234   :  { %v358_v16 = vpop.xlane.xlu1 %357 }
 0x235   :  { %2413 = vrcp.f32 %v358_v16 }
 0x23b   :  { %v2412_v18 = vpop.eup %2411 }
 0x23c   :  { %v141_v20 = vmul.f32 %v2412_v18, %v139_v15  ;;  %v920_v15 = vrot.slane %v919_v58, 4 }
 0x23e   :  { %v142_v21 = vsub.f32 2.0, %v141_v20 }
 0x23f   :  { %v2414_v24 = vpop.eup %2413 }
 0x240   :  { %v143_v25 = vmul.f32 %v2412_v18, %v142_v21  ;;  %v360_v12 = vmul.f32 %v2414_v24, %v358_v16  ;;  %v1131_v16 = vmul.f32 %v1962_v9, %v1962_v9  ;;  %v1135_v18 = vsel %vm29_vm0, %v1130_v6, 0.0 }
 0x241   :  { %v921_v21 = vadd.f32 %v920_v15, %v919_v58 }
 0x242   :  { %v144_v17 = vmul.f32 %v2632_v19, %v143_v25  ;;  %v361_v22 = vsub.f32 2.0, %v360_v12 }
 0x243   :  { %v922_v12 = vrot.slane %v921_v21, 2 }
 0x244   :  { %v362_v23 = vmul.f32 %v2414_v24, %v361_v22  ;;  %2106 = vmatmul.mubr.msk.f32.vlgmr.msra.gmra.mrb[2].mxu1 %vm29_vm0, %v144_v17  ;;  %v2693_v26 = vmul.f32 %v144_v17, %v2598_v61  ;;  %v1137_v24 = vsel %vm29_vm0, %v1131_v16, 0.0 }
 0x245   :  { %2302 = vmatpush3.bf16.msra.mxu1 %v2299_v3  ;;  %2138 = vmatprep.mubr.msk.f32.mxu1 %vm49_vm1, %v2559_v14  ;;  %v923_v22 = vadd.f32 %v922_v12, %v921_v21 }
 0x246   :  { %v363_v27 = vmul.f32 %v2651_v34, %v362_v23  ;;  %2304 = vmatprep.subr.bf16.mxu1 %v2303_v8 }
 0x248   :  { %2128 = vmatmul.mubr.msk.f32.vlgmr.msra.gmra.mrb[2].mxu0 %vm29_vm0, %v363_v27  ;;  %v2700_v28 = vmul.f32 %v363_v27, %v2601_v0  ;;  %v924_v27 = vrot.slane %v923_v22, 1 }
 0x249   :  { %2306 = vmatpush3.bf16.msra.mxu1 %v2303_v8  ;;  %2318 = vmatpush3.bf16.msra.mxu0 %v2315_v10 }
 0x24a   :  { %2320 = vmatprep.subr.bf16.mxu0 %v2319_v13  ;;  %2160 = vmatprep.mubr.msk.f32.mxu0 %vm49_vm1, %v2559_v14 }
 0x24b   :  { %2307 = vmatprep.subr.bf16.mxu1 %v2503_v56 }
 0x24c   :  { %2139 = vmatmul.mubr.msk.f32.vlgmr.msra.gmra.mrb[4].mxu1 %vm49_vm1, %v2591_v59 }
 0x24d   :  { %2322 = vmatpush3.bf16.msra.mxu0 %v2319_v13  ;;  %2149 = vmatprep.mubr.msk.f32.mxu1 %vm2504_vm3, %v2505_v5 }
 0x24e   :  { %2323 = vmatprep.subr.bf16.mxu0 %v2503_v56 }
 0x250   :  { %2161 = vmatmul.mubr.msk.f32.vlgmr.msra.gmra.mrb[4].mxu0 %vm49_vm1, %v2591_v59 }
 0x251   :  { %2171 = vmatprep.mubr.msk.f32.mxu0 %vm2504_vm3, %v2505_v5 }
 0x252   :  { %2310 = vmatpush3.bf16.xpose.msk.msra.mxu1 %vm2663_vm2, %v2299_v3  ;;  %v1129_v3 = vmul.f32 %v1960_v1, %v1960_v1 }
 0x253   :  { %2311 = vmatprep.subr.bf16.mxu1 %v2503_v56 }
 0x256   :  { %2326 = vmatpush3.bf16.xpose.msk.msra.mxu0 %vm2663_vm2, %v2315_v10 }
 0x257   :  { %2327 = vmatprep.subr.bf16.mxu0 %v2503_v56 }
 0x25a   :  { %2314 = vmatpush3.bf16.xpose.msk.msra.mxu1 %vm2663_vm2, %v2303_v8  ;;  %v1133_v8 = vsel %vm29_vm0, %v1129_v3, 0.0 }
 0x25b   :  { %v1134_v11 = vadd.f32 %v1133_v8, %v1132_v7 }
 0x25d   :  { %v1136_v20 = vadd.f32 %v1135_v18, %v1134_v11 }
 0x25e   :  { %2330 = vmatpush3.bf16.xpose.msk.msra.mxu0 %vm2663_vm2, %v2319_v13 }
 0x25f   :  { %v1138_v25 = vadd.f32 %v1137_v24, %v1136_v20 }
 0x261   :  { %v1139_v17 = vrot.slane %v1138_v25, 4 }
 0x263   :  { %v1140_v23 = vadd.f32 %v1139_v17, %v1138_v25  ;;  %v1971_v17 = vld [vmem:[%s2937_s0 + $0xc0] sm:$0xff] }
 0x317   :  { %v2724_v61 = vpop.f32.mrb[2].mxu1 }
 0x318   :  { %v2107_v0 = vpop.f32.mrb[3].mxu1 }
 0x319   :  { %v1141_v0 = vrot.slane %v1140_v23, 2 }
 0x31b   :  { %v2726_v19 = vpop.f32.mrb[2].mxu0 }
 0x31c   :  { %v2129_v29 = vpop.f32.mrb[3].mxu0 }
 0x31d   :  { %v925_v29 = vadd.f32 %v924_v27, %v923_v22  ;;  %v1972_v22 = vld [vmem:[%s2937_s0 + $0xc8] sm:$0xff] }
 0x31e   :  { %v1348_v27 = vmul.f32 %v1972_v22, %v1972_v22 }
 0x31f   :  { %v2140_v30 = vpop.f32.mrb[4].mxu1 }
 0x320   :  { %v569_v31 = vsel %vm29_vm0, %v2140_v30, -inf  ;;  %v2729_v32 = vpop.f32.mrb[5].mxu1 }
 0x321   :  { %570 = vmax.xlane.f32.xlu0 %v569_v31  ;;  %v926_v31 = vmax.f32 %v925_v29, 1e-24 }
 0x323   :  { %v2162_v33 = vpop.f32.mrb[4].mxu0 }
 0x324   :  { %v2731_v34 = vpop.f32.mrb[5].mxu0  ;;  %v788_v35 = vsel %vm29_vm0, %v2162_v33, -inf }
 0x325   :  { %789 = vmax.xlane.f32.xlu1 %v788_v35 }
 0x3ae   :  { %v571_v36 = vpop.xlane.xlu0 %570 }
 0x3af   :  { %v572_v37 = vsub.f32 %v2140_v30, %v571_v36  ;;  %v1142_v30 = vadd.f32 %v1141_v0, %v1140_v23  ;;  %v1347_v23 = vmul.f32 %v1971_v17, %v1971_v17  ;;  %v1973_v0 = vld [vmem:[%s2937_s0 + $0xd0] sm:$0xff] }
 0x3b0   :  { %v1349_v29 = vmul.f32 %v1973_v0, %v1973_v0 }
 0x3b1   :  { %v573_v38 = vmul.f32 1.442695, %v572_v37 }
 0x3b2   :  { %v790_v39 = vpop.xlane.xlu1 %789 }
 0x3b3   :  { %2415 = vpow2.f32 %v573_v38  ;;  %v791_v40 = vsub.f32 %v2162_v33, %v790_v39  ;;  %v1143_v33 = vrot.slane %v1142_v30, 1 }
 0x3b5   :  { %v792_v41 = vmul.f32 1.442695, %v791_v40  ;;  %v1144_v35 = vadd.f32 %v1143_v33, %v1142_v30  ;;  %v1351_v30 = vsel %vm29_vm0, %v1347_v23, 0.0  ;;  %v1974_v33 = vld [vmem:[%s2937_s0 + $0xd8] sm:$0xff] }
 0x3b7   :  { %2417 = vpow2.f32 %v792_v41  ;;  %v1145_v36 = vmax.f32 %v1144_v35, 1e-24 }
 0x3b8   :  { %2419 = vrsqrt.f32 %v926_v31  ;;  %v1352_v31 = vsel %vm29_vm0, %v1348_v27, 0.0 }
 0x3b9   :  { %2421 = vrsqrt.f32 %v1145_v36  ;;  %v1353_v35 = vadd.f32 %v1352_v31, %v1351_v30 }
 0x3bd   :  { %v2748_v53 = vpop.eup %2415 }
 0x3be   :  { %v575_v51 = vsel %vm29_vm0, %v2748_v53, 0.0 }
 0x3bf   :  { %576 = vadd.xlane.f32.xlu0 %v575_v51 }
 0x3c1   :  { %v2418_v10 = vpop.eup %2417 }
 0x3c2   :  { %v794_v13 = vsel %vm29_vm0, %v2418_v10, 0.0  ;;  %v2420_v37 = vpop.eup %2419 }
 0x3c3   :  { %795 = vadd.xlane.f32.xlu1 %v794_v13  ;;  %v928_v38 = vmul.f32 %v2420_v37, %v1947_v42  ;;  %v929_v39 = vmul.f32 %v2420_v37, %v1948_v43  ;;  %v2422_v41 = vpop.eup %2421  ;;  %v930_v44 = vmul.f32 %v2420_v37, %v1949_v46  ;;  %v931_v45 = vmul.f32 %v2420_v37, %v1950_v50 }
 0x3c4   :  { %v1147_v47 = vmul.f32 %v2422_v41, %v1959_v63  ;;  %v1148_v48 = vmul.f32 %v2422_v41, %v1960_v1  ;;  %v1149_v55 = vmul.f32 %v2422_v41, %v1961_v54  ;;  %v1150_v62 = vmul.f32 %v2422_v41, %v1962_v9 }
 0x3c5   :  { %v2331_v40 = vpack.c.bf16 %v929_v39, %v928_v38  ;;  %v2335_v49 = vpack.c.bf16 %v931_v45, %v930_v44  ;;  %v1350_v37 = vmul.f32 %v1974_v33, %v1974_v33  ;;  %v1354_v38 = vsel %vm29_vm0, %v1349_v29, 0.0  ;;  %v1983_v39 = vld [vmem:[%s2937_s0 + $0xe0] sm:$0xff] }
 0x3c6   :  { %v2347_v52 = vpack.c.bf16 %v1148_v48, %v1147_v47  ;;  %v2351_v51 = vpack.c.bf16 %v1150_v62, %v1149_v55  ;;  %v1355_v44 = vadd.f32 %v1354_v38, %v1353_v35  ;;  %v1566_v45 = vmul.f32 %v1983_v39, %v1983_v39 }
 0x3c7   :  { %2332 = vmatprep.subr.bf16.mxu1 %v2331_v40  ;;  %v1356_v48 = vsel %vm29_vm0, %v1350_v37, 0.0 }
 0x3c8   :  { %2348 = vmatprep.subr.bf16.mxu0 %v2347_v52  ;;  %v1570_v62 = vsel %vm29_vm0, %v1566_v45, 0.0 }
 0x44c   :  { %v577_v2 = vpop.xlane.xlu0 %576 }
 0x44d   :  { %2423 = vrcp.f32 %v577_v2 }
 0x450   :  { %v796_v57 = vpop.xlane.xlu1 %795 }
 0x451   :  { %2425 = vrcp.f32 %v796_v57 }
 0x457   :  { %v2424_v3 = vpop.eup %2423 }
 0x458   :  { %v579_v42 = vmul.f32 %v2424_v3, %v577_v2 }
 0x45a   :  { %v580_v43 = vsub.f32 2.0, %v579_v42 }
 0x45b   :  { %v2426_v4 = vpop.eup %2425 }
 0x45c   :  { %v581_v58 = vmul.f32 %v2424_v3, %v580_v43  ;;  %v798_v6 = vmul.f32 %v2426_v4, %v796_v57  ;;  %v1986_v57 = vld [vmem:[%s2937_s0 + $0xf8] sm:$0xff] }
 0x45e   :  { %v582_v46 = vmul.f32 %v2748_v53, %v581_v58  ;;  %v799_v50 = vsub.f32 2.0, %v798_v6 }
 0x460   :  { %v800_v63 = vmul.f32 %v2426_v4, %v799_v50  ;;  %2150 = vmatmul.mubr.msk.f32.vlgmr.msra.gmra.mrb[6].mxu1 %vm29_vm0, %v582_v46  ;;  %v2774_v1 = vmul.f32 %v582_v46, %v2729_v32  ;;  %v1569_v4 = vmul.f32 %v1986_v57, %v1986_v57 }
 0x461   :  { %2334 = vmatpush3.bf16.msra.mxu1 %v2331_v40  ;;  %2182 = vmatprep.mubr.msk.f32.mxu1 %vm49_vm1, %v2559_v14 }
 0x462   :  { %v801_v54 = vmul.f32 %v2418_v10, %v800_v63  ;;  %2336 = vmatprep.subr.bf16.mxu1 %v2335_v49  ;;  %v1575_v50 = vsel %vm29_vm0, %v1569_v4, 0.0 }
 0x464   :  { %2172 = vmatmul.mubr.msk.f32.vlgmr.msra.gmra.mrb[6].mxu0 %vm29_vm0, %v801_v54  ;;  %v2780_v7 = vmul.f32 %v801_v54, %v2731_v34 }
 0x465   :  { %2338 = vmatpush3.bf16.msra.mxu1 %v2335_v49  ;;  %2350 = vmatpush3.bf16.msra.mxu0 %v2347_v52 }
 0x466   :  { %2352 = vmatprep.subr.bf16.mxu0 %v2351_v51  ;;  %2204 = vmatprep.mubr.msk.f32.mxu0 %vm49_vm1, %v2559_v14 }
 0x467   :  { %2339 = vmatprep.subr.bf16.mxu1 %v2503_v56 }
 0x468   :  { %2183 = vmatmul.mubr.msk.f32.vlgmr.msra.gmra.mrb[8].mxu1 %vm49_vm1, %v2591_v59 }
 0x469   :  { %2354 = vmatpush3.bf16.msra.mxu0 %v2351_v51  ;;  %2193 = vmatprep.mubr.msk.f32.mxu1 %vm2504_vm3, %v2505_v5 }
 0x46a   :  { %2355 = vmatprep.subr.bf16.mxu0 %v2503_v56 }
 0x46c   :  { %2205 = vmatmul.mubr.msk.f32.vlgmr.msra.gmra.mrb[8].mxu0 %vm49_vm1, %v2591_v59 }
 0x46d   :  { %2215 = vmatprep.mubr.msk.f32.mxu0 %vm2504_vm3, %v2505_v5 }
 0x46e   :  { %2342 = vmatpush3.bf16.xpose.msk.msra.mxu1 %vm2663_vm2, %v2331_v40  ;;  %v1984_v40 = vld [vmem:[%s2937_s0 + $0xe8] sm:$0xff] }
 0x46f   :  { %2343 = vmatprep.subr.bf16.mxu1 %v2503_v56  ;;  %v1567_v47 = vmul.f32 %v1984_v40, %v1984_v40 }
 0x472   :  { %2358 = vmatpush3.bf16.xpose.msk.msra.mxu0 %vm2663_vm2, %v2347_v52  ;;  %v1357_v52 = vadd.f32 %v1356_v48, %v1355_v44 }
 0x473   :  { %2359 = vmatprep.subr.bf16.mxu0 %v2503_v56 }
 0x474   :  { %v1358_v43 = vrot.slane %v1357_v52, 4 }
 0x476   :  { %2346 = vmatpush3.bf16.xpose.msk.msra.mxu1 %vm2663_vm2, %v2335_v49  ;;  %v1985_v49 = vld [vmem:[%s2937_s0 + $0xf0] sm:$0xff]  ;;  %v1359_v46 = vadd.f32 %v1358_v43, %v1357_v52 }
 0x477   :  { %v1568_v55 = vmul.f32 %v1985_v49, %v1985_v49 }
 0x478   :  { %v1360_v54 = vrot.slane %v1359_v46, 2 }
 0x479   :  { %v1573_v58 = vsel %vm29_vm0, %v1568_v55, 0.0 }
 0x47a   :  { %2362 = vmatpush3.bf16.xpose.msk.msra.mxu0 %vm2663_vm2, %v2351_v51  ;;  %v1571_v51 = vsel %vm29_vm0, %v1567_v47, 0.0 }
 0x47b   :  { %v1572_v3 = vadd.f32 %v1571_v51, %v1570_v62 }
 0x47d   :  { %v1574_v6 = vadd.f32 %v1573_v58, %v1572_v3 }
 0x47f   :  { %v1576_v63 = vadd.f32 %v1575_v50, %v1574_v6 }
 0x533   :  { %v2804_v32 = vpop.f32.mrb[6].mxu1 }
 0x534   :  { %v2151_v34 = vpop.f32.mrb[7].mxu1 }
 0x535   :  { %v1577_v34 = vrot.slane %v1576_v63, 4 }
 0x537   :  { %v2806_v53 = vpop.f32.mrb[6].mxu0 }
 0x538   :  { %v2173_v8 = vpop.f32.mrb[7].mxu0 }
 0x539   :  { %v1361_v8 = vadd.f32 %v1360_v54, %v1359_v46 }
 0x53b   :  { %v2184_v10 = vpop.f32.mrb[8].mxu1 }
 0x53c   :  { %v1007_v9 = vsel %vm29_vm0, %v2184_v10, -inf  ;;  %v2809_v11 = vpop.f32.mrb[9].mxu1 }
 0x53d   :  { %1008 = vmax.xlane.f32.xlu0 %v1007_v9  ;;  %v1362_v9 = vrot.slane %v1361_v8, 1 }
 0x53f   :  { %v2206_v13 = vpop.f32.mrb[8].mxu0 }
 0x540   :  { %v2811_v15 = vpop.f32.mrb[9].mxu0  ;;  %v1226_v16 = vsel %vm29_vm0, %v2206_v13, -inf }
 0x541   :  { %1227 = vmax.xlane.f32.xlu1 %v1226_v16  ;;  %v1363_v16 = vadd.f32 %v1362_v9, %v1361_v8 }
 0x5ca   :  { %v1009_v18 = vpop.xlane.xlu0 %1008 }
 0x5cb   :  { %v1010_v20 = vsub.f32 %v2184_v10, %v1009_v18  ;;  %v1578_v10 = vadd.f32 %v1577_v34, %v1576_v63  ;;  %v20_v34 = vld [vmem:[%s2939_s2] sm:$0xff] }
 0x5cd   :  { %v1011_v21 = vmul.f32 1.442695, %v1010_v20  ;;  %v1364_v20 = vmax.f32 %v1363_v16, 1e-24  ;;  %v453_v16 = vmul.f32 %v2726_v19, %v20_v34 }
 0x5ce   :  { %v1228_v24 = vpop.xlane.xlu1 %1227 }
 0x5cf   :  { %2427 = vpow2.f32 %v1011_v21  ;;  %v1229_v25 = vsub.f32 %v2206_v13, %v1228_v24  ;;  %v1579_v13 = vrot.slane %v1578_v10, 2 }
 0x5d1   :  { %v1230_v12 = vmul.f32 1.442695, %v1229_v25  ;;  %v1580_v18 = vadd.f32 %v1579_v13, %v1578_v10  ;;  %v234_v10 = vmul.f32 %v2724_v61, %v20_v34 }
 0x5d3   :  { %2429 = vpow2.f32 %v1230_v12  ;;  %v1581_v21 = vrot.slane %v1580_v18, 1 }
 0x5d4   :  { %2431 = vrsqrt.f32 %v1364_v20 }
 0x5d5   :  { %v1582_v24 = vadd.f32 %v1581_v21, %v1580_v18  ;;  %v672_v18 = vmul.f32 %v2804_v32, %v20_v34  ;;  %v235_v21 = vsel %vm49_vm1, %v234_v10, 0.0 }
 0x5d7   :  { %v1583_v25 = vmax.f32 %v1582_v24, 1e-24  ;;  %v891_v24 = vmul.f32 %v2806_v53, %v20_v34  ;;  %v673_v61 = vsel %vm49_vm1, %v672_v18, 0.0 }
 0x5d9   :  { %v2828_v36 = vpop.eup %2427  ;;  %2433 = vrsqrt.f32 %v1583_v25  ;;  %v892_v19 = vsel %vm49_vm1, %v891_v24, 0.0 }
 0x5da   :  { %v1013_v41 = vsel %vm29_vm0, %v2828_v36, 0.0 }
 0x5db   :  { %1014 = vadd.xlane.f32.xlu0 %v1013_v41 }
 0x5dd   :  { %v2430_v2 = vpop.eup %2429 }
 0x5de   :  { %v1232_v42 = vsel %vm29_vm0, %v2430_v2, 0.0  ;;  %v2432_v12 = vpop.eup %2431 }
 0x5df   :  { %1233 = vadd.xlane.f32.xlu1 %v1232_v42  ;;  %v1366_v23 = vmul.f32 %v2432_v12, %v1971_v17  ;;  %v1367_v27 = vmul.f32 %v2432_v12, %v1972_v22  ;;  %v1368_v31 = vmul.f32 %v2432_v12, %v1973_v0  ;;  %v1369_v35 = vmul.f32 %v2432_v12, %v1974_v33 }
 0x5e0   :  { %v454_v12 = vsel %vm49_vm1, %v453_v16, 0.0 }
 0x5e1   :  { %v2363_v29 = vpack.c.bf16 %v1367_v27, %v1366_v23  ;;  %v2367_v41 = vpack.c.bf16 %v1369_v35, %v1368_v31 }
 0x5e3   :  { %v2434_v30 = vpop.eup %2433  ;;  %2364 = vmatprep.subr.bf16.mxu1 %v2363_v29 }
 0x5e4   :  { %v1585_v37 = vmul.f32 %v2434_v30, %v1983_v39  ;;  %v1586_v38 = vmul.f32 %v2434_v30, %v1984_v40  ;;  %v1587_v45 = vmul.f32 %v2434_v30, %v1985_v49  ;;  %v1588_v47 = vmul.f32 %v2434_v30, %v1986_v57 }
 0x5e6   :  { %v2379_v44 = vpack.c.bf16 %v1586_v38, %v1585_v37  ;;  %v2383_v48 = vpack.c.bf16 %v1588_v47, %v1587_v45 }
 0x5e8   :  { %2380 = vmatprep.subr.bf16.mxu0 %v2379_v44 }
 0x668   :  { %v1015_v52 = vpop.xlane.xlu0 %1014 }
 0x669   :  { %2435 = vrcp.f32 %v1015_v52 }
 0x66c   :  { %v1234_v55 = vpop.xlane.xlu1 %1233 }
 0x66d   :  { %2437 = vrcp.f32 %v1234_v55 }
 0x673   :  { %v2436_v62 = vpop.eup %2435 }
 0x674   :  { %v1017_v17 = vmul.f32 %v2436_v62, %v1015_v52 }
 0x676   :  { %v1018_v22 = vsub.f32 2.0, %v1017_v17 }
 0x677   :  { %v2438_v51 = vpop.eup %2437 }
 0x678   :  { %v1019_v3 = vmul.f32 %v2436_v62, %v1018_v22  ;;  %v1236_v42 = vmul.f32 %v2438_v51, %v1234_v55 }
 0x67a   :  { %v1020_v0 = vmul.f32 %v2828_v36, %v1019_v3  ;;  %v1237_v33 = vsub.f32 2.0, %v1236_v42 }
 0x67c   :  { %v1238_v39 = vmul.f32 %v2438_v51, %v1237_v33  ;;  %2194 = vmatmul.mubr.msk.f32.vlgmr.msra.gmra.mrb[10].mxu1 %vm29_vm0, %v1020_v0  ;;  %v2854_v40 = vmul.f32 %v1020_v0, %v2809_v11 }
 0x67d   :  { %2366 = vmatpush3.bf16.msra.mxu1 %v2363_v29  ;;  %2226 = vmatprep.mubr.msk.f32.mxu1 %vm49_vm1, %v2559_v14 }
 0x67e   :  { %v1239_v49 = vmul.f32 %v2430_v2, %v1238_v39  ;;  %2368 = vmatprep.subr.bf16.mxu1 %v2367_v41  ;;  %v231_v39 = vsel %vm29_vm0, %v2693_v26, 0.0 }
 0x680   :  { %2216 = vmatmul.mubr.msk.f32.vlgmr.msra.gmra.mrb[10].mxu0 %vm29_vm0, %v1239_v49  ;;  %v2860_v57 = vmul.f32 %v1239_v49, %v2811_v15  ;;  %v669_v49 = vsel %vm29_vm0, %v2774_v1, 0.0  ;;  %v1781_v1 = vld [vmem:[%s2940_s3] sm:$0xff]  ;;  %s2506_s3 = smov [#allocation3]  }
 0x681   :  { %2370 = vmatpush3.bf16.msra.mxu1 %v2367_v41  ;;  %2382 = vmatpush3.bf16.msra.mxu0 %v2379_v44  ;;  %s1895_s5 = sshll.u32 %s2506_s3, 4  ;;  %s1896_s5 = int_to_ptr.vmem [resolvable:$true] %s1895_s5 }
 0x682   :  { %2384 = vmatprep.subr.bf16.mxu0 %v2383_v48  ;;  %2248 = vmatprep.mubr.msk.f32.mxu0 %vm49_vm1, %v2559_v14  ;;  %v1326_v26 = vsel %vm29_vm0, %v2860_v57, 0.0  ;;  %s2479_s6 = scalar_lea.vmem %s1896_s5, 128  ;;  %p2484_p1 = scmp.lt.s32.totalorder %s1896_s5, %s1896_s5 }
 0x683   :  { %2371 = vmatprep.subr.bf16.mxu1 %v2503_v56  ;;  %p2480_p0 = scmp.ne.s32.totalorder %s1896_s5, %s2479_s6  ;;  %p2485_p2 = scmp.lt.s32.totalorder %s2479_s6, %s2479_s6 }
 0x684   :  { %2227 = vmatmul.mubr.msk.f32.vlgmr.msra.gmra.mrb[12].mxu1 %vm49_vm1, %v2591_v59 }
 0x685   :  { %2386 = vmatpush3.bf16.msra.mxu0 %v2383_v48  ;;  %2237 = vmatprep.mubr.msk.f32.mxu1 %vm2504_vm3, %v2505_v5  ;;  %p2486_p3 = por %p2485_p2, %p2484_p1 }
 0x686   :  { %2387 = vmatprep.subr.bf16.mxu0 %v2503_v56 }
 0x687   :  { %p2487_p4 = pnand %p2486_p3, %p2480_p0 }
 0x688   :  { %2249 = vmatmul.mubr.msk.f32.vlgmr.msra.gmra.mrb[12].mxu0 %vm49_vm1, %v2591_v59 }
 0x689   :  { %2259 = vmatprep.mubr.msk.f32.mxu0 %vm2504_vm3, %v2505_v5 }
 0x68a   :  { %2374 = vmatpush3.bf16.xpose.msk.msra.mxu1 %vm2663_vm2, %v2363_v29 }
 0x68b   :  { %2375 = vmatprep.subr.bf16.mxu1 %v2503_v56 }
 0x68e   :  { %2390 = vmatpush3.bf16.xpose.msk.msra.mxu0 %vm2663_vm2, %v2379_v44 }
 0x68f   :  { %2391 = vmatprep.subr.bf16.mxu0 %v2503_v56 }
 0x692   :  { %2378 = vmatpush3.bf16.xpose.msk.msra.mxu1 %vm2663_vm2, %v2367_v41 }
 0x693   :  { %2262 = vmatprep.subr.mxu1 %v2505_v5 }
 0x696   :  { %2394 = vmatpush3.bf16.xpose.msk.msra.mxu0 %vm2663_vm2, %v2383_v48 }
 0x74f   :  { %v1102_v14 = vpop.f32.mrb[10].mxu1 }
 0x750   :  { %v2195_v59 = vpop.f32.mrb[11].mxu1  ;;  %v1110_v25 = vmul.f32 %v1102_v14, %v20_v34  ;;  %v888_v14 = vsel %vm29_vm0, %v2780_v7, 0.0 }
 0x751   :  { %v1107_v59 = vsel %vm29_vm0, %v2854_v40, 0.0 }
 0x752   :  { %v1111_v32 = vsel %vm49_vm1, %v1110_v25, 0.0 }
 0x753   :  { %v1321_v11 = vpop.f32.mrb[10].mxu0 }
 0x754   :  { %v2217_v15 = vpop.f32.mrb[11].mxu0  ;;  %v1329_v23 = vmul.f32 %v1321_v11, %v20_v34 }
 0x756   :  { %v1330_v27 = vsel %vm49_vm1, %v1329_v23, 0.0 }
 0x757   :  { %v2228_v36 = vpop.f32.mrb[12].mxu1 }
 0x758   :  { %v1445_v2 = vsel %vm29_vm0, %v2228_v36, -inf  ;;  %v1436_v43 = vpop.f32.mrb[13].mxu1 }
 0x759   :  { %1446 = vmax.xlane.f32.xlu0 %v1445_v2 }
 0x75b   :  { %v2250_v4 = vpop.f32.mrb[12].mxu0 }
 0x75c   :  { %v1655_v58 = vpop.f32.mrb[13].mxu0  ;;  %v1664_v56 = vsel %vm29_vm0, %v2250_v4, -inf }
 0x75d   :  { %1665 = vmax.xlane.f32.xlu1 %v1664_v56 }
 0x7e6   :  { %v1447_v6 = vpop.xlane.xlu0 %1446 }
 0x7e7   :  { %v1448_v46 = vsub.f32 %v2228_v36, %v1447_v6 }
 0x7e9   :  { %v1449_v50 = vmul.f32 1.442695, %v1448_v46 }
 0x7ea   :  { %v1666_v63 = vpop.xlane.xlu1 %1665 }
 0x7eb   :  { %2439 = vpow2.f32 %v1449_v50  ;;  %v1667_v60 = vsub.f32 %v2250_v4, %v1666_v63 }
 0x7ed   :  { %v1668_v54 = vmul.f32 1.442695, %v1667_v60 }
 0x7ef   :  { %2441 = vpow2.f32 %v1668_v54 }
 0x7f5   :  { %v2440_v8 = vpop.eup %2439 }
 0x7f6   :  { %v1451_v9 = vsel %vm29_vm0, %v2440_v8, 0.0 }
 0x7f7   :  { %1452 = vadd.xlane.f32.xlu0 %v1451_v9 }
 0x7f9   :  { %v2442_v13 = vpop.eup %2441 }
 0x7fa   :  { %v1670_v20 = vsel %vm29_vm0, %v2442_v13, 0.0 }
 0x7fb   :  { %1671 = vadd.xlane.f32.xlu1 %v1670_v20  ;;  %236 = vadd.xlane.f32.xlu0 %v235_v21 }
 0x7ff   :  { %455 = vadd.xlane.f32.xlu1 %v454_v12  ;;  %674 = vadd.xlane.f32.xlu0 %v673_v61 }
 0x803   :  { %893 = vadd.xlane.f32.xlu1 %v892_v19  ;;  %1112 = vadd.xlane.f32.xlu0 %v1111_v32 }
 0x807   :  { %1331 = vadd.xlane.f32.xlu1 %v1330_v27 }
 0x884   :  { %v1453_v29 = vpop.xlane.xlu0 %1452 }
 0x885   :  { %2443 = vrcp.f32 %v1453_v29 }
 0x888   :  { %v1672_v53 = vpop.xlane.xlu1 %1671  ;;  %v237_v7 = vpop.xlane.xlu0 %236 }
 0x889   :  { %2445 = vrcp.f32 %v1672_v53  ;;  %v1910_v36 = vmul.f32 -1.442695, %v237_v7 }
 0x88b   :  { %2447 = vpow2.f32 %v1910_v36 }
 0x88c   :  { %v456_v15 = vpop.xlane.xlu1 %455  ;;  %v675_v40 = vpop.xlane.xlu0 %674 }
 0x88d   :  { %v1922_v2 = vmul.f32 -1.442695, %v456_v15  ;;  %v1934_v57 = vmul.f32 -1.442695, %v675_v40 }
 0x88f   :  { %v2444_v30 = vpop.eup %2443  ;;  %2449 = vpow2.f32 %v1922_v2 }
 0x890   :  { %v1455_v31 = vmul.f32 %v2444_v30, %v1453_v29  ;;  %v1113_v4 = vpop.xlane.xlu0 %1112  ;;  %2451 = vpow2.f32 %v1934_v57 }
 0x891   :  { %v1958_v56 = vmul.f32 -1.442695, %v1113_v4 }
 0x892   :  { %v1456_v35 = vsub.f32 2.0, %v1455_v31 }
 0x893   :  { %v2446_v37 = vpop.eup %2445 }
 0x894   :  { %v1457_v38 = vmul.f32 %v2444_v30, %v1456_v35  ;;  %v1674_v41 = vmul.f32 %v2446_v37, %v1672_v53 }
 0x895   :  { %v2448_v50 = vpop.eup %2447 }
 0x896   :  { %v1458_v44 = vmul.f32 %v2440_v8, %v1457_v38  ;;  %v1675_v45 = vsub.f32 2.0, %v1674_v41  ;;  %v241_v60 = vadd.f32 1.0, %v2448_v50 }
 0x898   :  { %v1676_v47 = vmul.f32 %v2446_v37, %v1675_v45  ;;  %2238 = vmatmul.mubr.msk.f32.vlgmr.msra.gmra.mrb[14].mxu1 %vm29_vm0, %v1458_v44  ;;  %v1544_v48 = vmul.f32 %v1458_v44, %v1436_v43  ;;  %v894_v43 = vpop.xlane.xlu1 %893 }
 0x899   :  { %2264 = vmatprep.mubr.msk.f32.mxu1 %vm2504_vm3, %v2505_v5  ;;  %v450_v5 = vsel %vm29_vm0, %v2700_v28, 0.0  ;;  %2263 = vmatpush3.msra.mxu1 %v1781_v1  ;;  %v2450_v63 = vpop.eup %2449 }
 0x89a   :  { %v1677_v52 = vmul.f32 %v2442_v13, %v1676_v47  ;;  %v1545_v11 = vsel %vm29_vm0, %v1544_v48, 0.0  ;;  %v2452_v54 = vpop.eup %2451 }
 0x89b   :  { %v679_v10 = vadd.f32 1.0, %v2452_v54 }
 0x89c   :  { %2260 = vmatmul.mubr.msk.f32.vlgmr.msra.gmra.mrb[14].mxu0 %vm29_vm0, %v1677_v52  ;;  %v1763_v55 = vmul.f32 %v1677_v52, %v1655_v58  ;;  %v1946_v58 = vmul.f32 -1.442695, %v894_v43  ;;  %v1332_v6 = vpop.xlane.xlu1 %1331 }
 0x89d   :  { %v1970_v46 = vmul.f32 -1.442695, %v1332_v6 }
 0x89e   :  { %v1764_v28 = vsel %vm29_vm0, %v1763_v55, 0.0  ;;  %2453 = vpow2.f32 %v1946_v58 }
 0x89f   :  { %2455 = vpow2.f32 %v1958_v56 }
 0x8a0   :  { %2457 = vpow2.f32 %v1970_v46 }
 0x8a1   :  { %2459 = vrcp.f32 %v241_v60 }
 0x8a8   :  { %v2454_v8 = vpop.eup %2453 }
 0x8a9   :  { %v2456_v9 = vpop.eup %2455  ;;  %v898_v13 = vadd.f32 1.0, %v2454_v8 }
 0x8aa   :  { %v1117_v16 = vadd.f32 1.0, %v2456_v9  ;;  %v2458_v18 = vpop.eup %2457 }
 0x8ab   :  { %v1336_v24 = vadd.f32 1.0, %v2458_v18  ;;  %v2460_v25 = vpop.eup %2459 }
 0x96b   :  { %v1540_v62 = vpop.f32.mrb[14].mxu1 }
 0x96c   :  { %v1548_v17 = vmul.f32 %v1540_v62, %v20_v34  ;;  %v2239_v22 = vpop.f32.mrb[15].mxu1 }
 0x96e   :  { %v1549_v51 = vsel %vm49_vm1, %v1548_v17, 0.0 }
 0x96f   :  { %v1759_v3 = vpop.f32.mrb[14].mxu0  ;;  %1550 = vadd.xlane.f32.xlu0 %v1549_v51 }
 0x970   :  { %v1767_v42 = vmul.f32 %v1759_v3, %v20_v34  ;;  %v2261_v0 = vpop.f32.mrb[15].mxu0  ;;  %v460_v34 = vadd.f32 1.0, %v2450_v63 }
 0x972   :  { %v1768_v33 = vsel %vm49_vm1, %v1767_v42, 0.0  ;;  %2461 = vrcp.f32 %v460_v34 }
 0x973   :  { %1769 = vadd.xlane.f32.xlu1 %v1768_v33  ;;  %232 = vadd.xlane.f32.xlu0 %v231_v39  ;;  %2463 = vrcp.f32 %v679_v10 }
 0x974   :  { %2465 = vrcp.f32 %v898_v13 }
 0x975   :  { %2467 = vrcp.f32 %v1117_v16 }
 0x977   :  { %451 = vadd.xlane.f32.xlu1 %v450_v5  ;;  %670 = vadd.xlane.f32.xlu0 %v669_v49 }
 0x97b   :  { %889 = vadd.xlane.f32.xlu1 %v888_v14  ;;  %1108 = vadd.xlane.f32.xlu0 %v1107_v59 }
 0x97c   :  { %v2462_v32 = vpop.eup %2461 }
 0x97d   :  { %v2464_v27 = vpop.eup %2463 }
 0x97e   :  { %v2466_v35 = vpop.eup %2465 }
 0x97f   :  { %1327 = vadd.xlane.f32.xlu1 %v1326_v26  ;;  %1546 = vadd.xlane.f32.xlu0 %v1545_v11  ;;  %v2468_v37 = vpop.eup %2467 }
 0x983   :  { %1765 = vadd.xlane.f32.xlu1 %v1764_v28 }
 0x9fc   :  { %v1551_v20 = vpop.xlane.xlu0 %1550 }
 0x9fd   :  { %v1982_v21 = vmul.f32 -1.442695, %v1551_v20 }
 0x9ff   :  { %2469 = vpow2.f32 %v1982_v21 }
 0xa00   :  { %v1770_v12 = vpop.xlane.xlu1 %1769  ;;  %v233_v61 = vpop.xlane.xlu0 %232  ;;  %2471 = vrcp.f32 %v1336_v24 }
 0xa01   :  { %v1994_v23 = vmul.f32 -1.442695, %v1770_v12  ;;  %v244_v19 = vmul.f32 %v2460_v25, %v233_v61 }
 0xa03   :  { %2473 = vpow2.f32 %v1994_v23  ;;  %246 = vst.msk [vmem:[#allocation2] sm:$0xff] %vm245_vm4, %v244_v19 }
 0xa04   :  { %v452_v29 = vpop.xlane.xlu1 %451  ;;  %v671_v53 = vpop.xlane.xlu0 %670 }
 0xa05   :  { %v463_v30 = vmul.f32 %v2462_v32, %v452_v29  ;;  %v682_v31 = vmul.f32 %v2464_v27, %v671_v53 }
 0xa07   :  { %465 = vst.msk [vmem:[#allocation2] sm:$0xff] %vm464_vm5, %v463_v30 }
 0xa08   :  { %684 = vst.msk [vmem:[#allocation2] sm:$0xff] %vm683_vm6, %v682_v31  ;;  %v890_v38 = vpop.xlane.xlu1 %889  ;;  %v1109_v41 = vpop.xlane.xlu0 %1108 }
 0xa09   :  { %v2470_v44 = vpop.eup %2469  ;;  %v901_v45 = vmul.f32 %v2466_v35, %v890_v38  ;;  %v1120_v47 = vmul.f32 %v2468_v37, %v1109_v41 }
 0xa0a   :  { %v1555_v48 = vadd.f32 1.0, %v2470_v44  ;;  %v2472_v52 = vpop.eup %2471 }
 0xa0b   :  { %903 = vst.msk [vmem:[#allocation2] sm:$0xff] %vm902_vm7, %v901_v45 }
 0xa0c   :  { %2475 = vrcp.f32 %v1555_v48  ;;  %1122 = vst.msk [vmem:[#allocation2] sm:$0xff] %vm1121_vm8, %v1120_v47  ;;  %v1328_v55 = vpop.xlane.xlu1 %1327  ;;  %v1547_v3 = vpop.xlane.xlu0 %1546 }
 0xa0d   :  { %v2474_v62 = vpop.eup %2473  ;;  %v1339_v17 = vmul.f32 %v2472_v52, %v1328_v55 }
 0xa0e   :  { %v1774_v22 = vadd.f32 1.0, %v2474_v62 }
 0xa0f   :  { %1341 = vst.msk [vmem:[#allocation2] sm:$0xff] %vm1340_vm9, %v1339_v17 }
 0xa10   :  { %2477 = vrcp.f32 %v1774_v22  ;;  %v1766_v33 = vpop.xlane.xlu1 %1765 }
 0xa16   :  { %v2476_v51 = vpop.eup %2475 }
 0xa17   :  { %v1558_v42 = vmul.f32 %v2476_v51, %v1547_v3 }
 0xa19   :  { %1560 = vst.msk [vmem:[#allocation2] sm:$0xff] %vm1559_vm10, %v1558_v42 }
 0xa1a   :  { %v2478_v0 = vpop.eup %2477 }
 0xa1b   :  { %v1777_v39 = vmul.f32 %v2478_v0, %v1766_v33 }
 0xa1d   :  { %1779 = vst.msk [vmem:[#allocation2] sm:$0xff] %vm1778_vm11, %v1777_v39 }
 0xa24   :  { %v1780_v5 = vld [vmem:[#allocation2] sm:$0xff] }
 0xa25   :  { %1782 = vxpose.xlu0.b32.start.end [1/1] (short) (narrow) %v1780_v5, 8 }
 0xaa5   :  { %v1798_v49 = vpop.trf.xlu0 }
 0xaa6   :  { %2265 = vmatmul.mubr.msk.f32.vlgmr.msra.gmra.mrb[16].mxu1 %vm1814_vm12, %v1798_v49 }
 0xb79   :  { %v1884_v14 = vpop.f32.mrb[16].mxu1 }
 0xb7a   :  { %1888 = vst [vmem:[#allocation3] sm:$0xff] %v1884_v14  ;;  %v2266_v59 = vpop.f32.mrb[17].mxu1 }
 0xb7b   :  { %2490 = shalt.err (!%p2487_p4)
}
 0xb7c   :  { %s2491_s1 = scalar_lea.hbm %s2941_s4, 128 }
 0xb7d   :  { %p2492_p5 = scmp.ne.s32.totalorder %s2941_s4, %s2491_s1  ;;  %p2495_p6 = scmp.lt.u32.totalorder %s2491_s1, %s2941_s4 }
 0xb7f   :  { %p2497_p7 = pnand %p2495_p6, %p2492_p5 }
 0xb81   :  { %2500 = shalt.err (!%p2497_p7)
}
 0xb82   :  { %1898 = dma.vmem_to_hbm [thread:$0]  %s1896_s5, 128, %s2941_s4, [#allocation4]  }
 0xb83   :  { %2501 = dma.done.wait [#allocation4], 128  }
 0xb84   :  { %2502 = vsyncadd [#allocation4], 4294967168 }
 0xb85   :  { %1902 = vsyncpa [#allocation4], 1 }

</bundles_post_ra>
